<compile_context>
chip_gen: v7x
topology: tpu7x:2x2x1
jax: 0.10.0
libtpu: 0.0.40
codegen_flags: <defaults>
</compile_context>

<pallas_src>
import math
import functools

import jax
import jax.numpy as jnp
from jax.experimental import pallas as pl
from jax.experimental.pallas import tpu as pltpu

F32 = jnp.float32
BF16 = jnp.bfloat16

# ------------------------- scaled-down model config -------------------------
TEXT_VOCAB = 100     # vocabulary size
TEXT_EMB = 64        # text embedding dim       (orig 300)
NINP = 128           # transformer model dim    (orig 512)
NHEAD = 4            # attention heads          (orig 8)
NHID = 256           # FFN hidden dim           (orig 2048)
NLAYERS = 2          # encoder layers           (orig 3)
MAX_LEN = 64         # positional-encoding table length
HEAD_DIM = NINP // NHEAD


# =============================== Pallas kernels ===============================

def _ln(x, g, b, eps=1e-5):
    # LayerNorm over the last axis, f32 math.
    mu = jnp.mean(x, axis=-1, keepdims=True)
    var = jnp.mean((x - mu) ** 2, axis=-1, keepdims=True)
    return (x - mu) * jax.lax.rsqrt(var + eps) * g + b


def _stem_kernel(x_ref, w_ref, b_ref, pe_ref, o_ref, *, scale):
    # Fused: emb_proj(x) * sqrt(ninp) + positional encoding  (dropout = no-op).
    x = x_ref[0].astype(BF16)                                        # (L, TEXT_EMB)
    y = jnp.dot(x, w_ref[...], preferred_element_type=F32) + b_ref[...]
    o_ref[0] = y * scale + pe_ref[...]


def _encoder_layer_kernel(x_ref, wqkv_ref, bqkv_ref, wo_ref, bo_ref,
                          ln1g_ref, ln1b_ref, w1_ref, b1_ref, w2_ref, b2_ref,
                          ln2g_ref, ln2b_ref, *rest,
                          nhead, scale, final_norm):
    # One full post-norm TransformerEncoderLayer for one batch element,
    # entirely in VMEM/vregs.  If final_norm, also applies the encoder's final
    # LayerNorm (extra gamma/beta refs arrive in *rest before the output ref).
    o_ref = rest[-1]
    x = x_ref[0]                                                     # (L, E) f32
    L, E = x.shape
    dh = E // nhead

    # ---- fused QKV projection: single (E, 3E) matmul, bf16 in / f32 acc ----
    qkv = jnp.dot(x.astype(BF16), wqkv_ref[...],
                  preferred_element_type=F32) + bqkv_ref[...]        # (L, 3E)
    q = qkv[:, :E]
    k = qkv[:, E:2 * E]
    v = qkv[:, 2 * E:]

    # ---- all heads in one program; accumulate the output projection per head
    # (avoids concat and any head transposes).
    qkt_dims = (((1,), (1,)), ((), ()))                              # q @ k.T
    attn = None
    for h in range(nhead):
        sl = slice(h * dh, (h + 1) * dh)
        qh = q[:, sl].astype(BF16)                                   # (L, dh)
        kh = k[:, sl].astype(BF16)
        vh = v[:, sl].astype(BF16)
        s = jax.lax.dot_general(qh, kh, qkt_dims,
                                preferred_element_type=F32) * scale  # (L, L) f32
        s = s - jnp.max(s, axis=-1, keepdims=True)
        p = jnp.exp(s)
        p = p * pl.reciprocal(jnp.sum(p, axis=-1, keepdims=True), approx=True)
        oh = jnp.dot(p.astype(BF16), vh, preferred_element_type=F32)  # (L, dh)
        contrib = jnp.dot(oh.astype(BF16), wo_ref[sl, :],
                          preferred_element_type=F32)                 # (L, E)
        attn = contrib if attn is None else attn + contrib
    attn = attn + bo_ref[...]

    # ---- residual + LayerNorm1 (f32) ----
    y = _ln(x + attn, ln1g_ref[...], ln1b_ref[...])

    # ---- FFN (Linear -> ReLU -> Linear) + residual + LayerNorm2, fused ----
    h1 = jnp.dot(y.astype(BF16), w1_ref[...], preferred_element_type=F32) + b1_ref[...]
    h1 = jnp.maximum(h1, 0.0)
    ff = jnp.dot(h1.astype(BF16), w2_ref[...], preferred_element_type=F32) + b2_ref[...]
    y = _ln(y + ff, ln2g_ref[...], ln2b_ref[...])

    if final_norm:
        fng_ref, fnb_ref = rest[0], rest[1]
        y = _ln(y, fng_ref[...], fnb_ref[...])

    o_ref[0] = y


# =============================== wrappers ===============================

def _rep_spec(shape):
    # Full-array block, constant index_map (resident across the batch grid).
    n = len(shape)
    return pl.BlockSpec(shape, lambda b, n=n: (0,) * n)


def stem(x_emb, w, b, pe):
    # x_emb: (B, L, TEXT_EMB) f32, w: (TEXT_EMB, NINP) bf16, b/pe: f32
    B, L, D = x_emb.shape
    E = w.shape[1]
    kern = functools.partial(_stem_kernel, scale=math.sqrt(E))
    return pl.pallas_call(
        kern,
        grid=(B,),
        in_specs=[pl.BlockSpec((1, L, D), lambda i: (i, 0, 0)),
                  _rep_spec(w.shape), _rep_spec(b.shape), _rep_spec(pe.shape)],
        out_specs=pl.BlockSpec((1, L, E), lambda i: (i, 0, 0)),
        out_shape=jax.ShapeDtypeStruct((B, L, E), F32),
        compiler_params=pltpu.CompilerParams(dimension_semantics=("parallel",)),
    )(x_emb, w, b, pe)


def encoder_layer(x, p, final_norm_params=None):
    # x: (B, L, E) f32.  One fused pallas_call for the entire layer.
    B, L, E = x.shape
    final_norm = final_norm_params is not None
    kern = functools.partial(_encoder_layer_kernel,
                             nhead=NHEAD,
                             scale=1.0 / math.sqrt(E // NHEAD),
                             final_norm=final_norm)
    args = [x, p['wqkv'], p['bqkv'], p['wo'], p['bo'],
            p['ln1_g'], p['ln1_b'], p['w1'], p['b1'], p['w2'], p['b2'],
            p['ln2_g'], p['ln2_b']]
    in_specs = [pl.BlockSpec((1, L, E), lambda i: (i, 0, 0))]
    in_specs += [_rep_spec(a.shape) for a in args[1:]]
    if final_norm:
        args += list(final_norm_params)
        in_specs += [_rep_spec(a.shape) for a in final_norm_params]
    return pl.pallas_call(
        kern,
        grid=(B,),
        in_specs=in_specs,
        out_specs=pl.BlockSpec((1, L, E), lambda i: (i, 0, 0)),
        out_shape=jax.ShapeDtypeStruct((B, L, E), F32),
        compiler_params=pltpu.CompilerParams(dimension_semantics=("parallel",)),
    )(*args)


def transformer_question_encoder(params, src_tokens):
    # src_tokens: (L, B) int32 (PyTorch seq-first convention).
    # Returns (L, B, NINP) float32, matching the PyTorch module's output.
    L, B = src_tokens.shape
    # Embedding lookup stays an XLA gather; activations kept batch-first so no
    # per-layer HBM transposes are needed.
    x = params['text_emb'][src_tokens.T]                       # (B, L, TEXT_EMB)
    x = stem(x, params['proj_w'], params['proj_b'], params['pe'][:L])
    layers = params['layers']
    for i, lp in enumerate(layers):
        fn = ((params['norm_g'], params['norm_b'])
              if i == len(layers) - 1 else None)               # fuse final LN into last layer
        x = encoder_layer(x, lp, fn)
    return x.transpose(1, 0, 2)                                # (L, B, NINP)


# =============================== parameter init ===============================

class KeyGen:
    def __init__(self, key):
        self.key = key

    def __call__(self):
        self.key, k = jax.random.split(self.key)
        return k


def _lin(kg, fi, fo):
    # Column-major-for-x@w layout (self-consistent with this script; a real
    # PyTorch checkpoint's (out, in) weights would need a transpose on load).
    w = (jax.random.normal(kg(), (fi, fo), F32) / math.sqrt(fi)).astype(BF16)
    b = jnp.zeros((1, fo), F32)
    return w, b


def _init_layer(kg, e, nhid):
    wqkv, bqkv = _lin(kg, e, 3 * e)
    wo, bo = _lin(kg, e, e)
    w1, b1 = _lin(kg, e, nhid)
    w2, b2 = _lin(kg, nhid, e)
    return dict(wqkv=wqkv, bqkv=bqkv, wo=wo, bo=bo,
                w1=w1, b1=b1, w2=w2, b2=b2,
                ln1_g=jnp.ones((1, e), F32), ln1_b=jnp.zeros((1, e), F32),
                ln2_g=jnp.ones((1, e), F32), ln2_b=jnp.zeros((1, e), F32))


def make_pe(max_len, d):
    pos = jnp.arange(max_len, dtype=F32)[:, None]
    div = jnp.exp(jnp.arange(0, d, 2, dtype=F32) * (-math.log(10000.0) / d))
    pe = jnp.zeros((max_len, d), F32)
    pe = pe.at[:, 0::2].set(jnp.sin(pos * div))
    pe = pe.at[:, 1::2].set(jnp.cos(pos * div))
    return pe                                            # (max_len, d)


def init_params(seed=0):
    kg = KeyGen(jax.random.PRNGKey(seed))
    text_emb = jax.random.normal(kg(), (TEXT_VOCAB, TEXT_EMB), F32) * 0.1
    text_emb = text_emb.at[0].set(0.0)                   # padding_idx = 0
    proj_w, proj_b = _lin(kg, TEXT_EMB, NINP)
    return dict(text_emb=text_emb,
                proj_w=proj_w, proj_b=proj_b,
                pe=make_pe(MAX_LEN, NINP),
                layers=[_init_layer(kg, NINP, NHID) for _ in range(NLAYERS)],
                norm_g=jnp.ones((1, NINP), F32),
                norm_b=jnp.zeros((1, NINP), F32))


# =============================== main ===============================

if __name__ == "__main__":
    params = init_params(0)

    L, B = 8, 2
    src = jax.random.randint(jax.random.PRNGKey(0), (L, B), 1, TEXT_VOCAB,
                             dtype=jnp.int32)

    fwd = jax.jit(transformer_question_encoder)
    out = fwd(params, src)
    jax.block_until_ready(out)

    assert out.shape == (L, B, NINP)
    assert bool(jnp.all(jnp.isfinite(out)))
    print("KERNEL_OK")
</pallas_src>

<mosaic_0001>
module attributes {stable_mosaic.version = 11 : i64} {
  func.func @_stem_kernel(%arg0: i32, %arg1: memref<1x8x64xf32, #tpu.memory_space<vmem>>, %arg2: memref<64x128xbf16, #tpu.memory_space<vmem>>, %arg3: memref<1x128xf32, #tpu.memory_space<vmem>>, %arg4: memref<8x128xf32, #tpu.memory_space<vmem>>, %arg5: memref<1x8x128xf32, #tpu.memory_space<vmem>>) attributes {dimension_semantics = [#tpu.dimension_semantics<parallel>], iteration_bounds = array<i64: 2>, scalar_prefetch = 0 : i64, scratch_operands = 0 : i64, tpu.core_type = #tpu.core_type<tc>, window_params = [{transform_indices = @transform_0, window_bounds = array<i64: 1, 8, 64>}, {pipeline_mode = #tpu.pipeline_mode<synchronous>, transform_indices = @transform_1, window_bounds = array<i64: 64, 128>}, {pipeline_mode = #tpu.pipeline_mode<synchronous>, transform_indices = @transform_2, window_bounds = array<i64: 1, 128>}, {pipeline_mode = #tpu.pipeline_mode<synchronous>, transform_indices = @transform_3, window_bounds = array<i64: 8, 128>}, {transform_indices = @transform_4, window_bounds = array<i64: 1, 8, 128>}]} {
    %c0 = arith.constant 0 : index
    %c0_0 = arith.constant 0 : index
    %c0_1 = arith.constant 0 : index
    %0 = vector.load %arg1[%c0, %c0_0, %c0_1] : memref<1x8x64xf32, #tpu.memory_space<vmem>>, vector<1x8x64xf32>
    %1 = vector.shape_cast %0 : vector<1x8x64xf32> to vector<8x64xf32>
    %2 = arith.truncf %1 : vector<8x64xf32> to vector<8x64xbf16>
    %c0_2 = arith.constant 0 : index
    %c0_3 = arith.constant 0 : index
    %3 = vector.load %arg2[%c0_2, %c0_3] : memref<64x128xbf16, #tpu.memory_space<vmem>>, vector<64x128xbf16>
    %cst = arith.constant dense<0.000000e+00> : vector<8x128xf32>
    %4 = tpu.matmul %2, %3, %cst {dimension_numbers = #tpu.dot_dimension_numbers<[1], [0], [0], [1], [0, 0, 1, 1], [], []>} : vector<8x64xbf16>, vector<64x128xbf16>, vector<8x128xf32> -> vector<8x128xf32>
    %c0_4 = arith.constant 0 : index
    %c0_5 = arith.constant 0 : index
    %5 = vector.load %arg3[%c0_4, %c0_5] : memref<1x128xf32, #tpu.memory_space<vmem>>, vector<1x128xf32>
    %6 = vector.broadcast %5 : vector<1x128xf32> to vector<8x128xf32>
    %7 = arith.addf %4, %6 : vector<8x128xf32>
    %cst_6 = arith.constant 11.3137083 : f32
    %8 = vector.broadcast %cst_6 : f32 to vector<8x128xf32>
    %9 = arith.mulf %7, %8 : vector<8x128xf32>
    %c0_7 = arith.constant 0 : index
    %c0_8 = arith.constant 0 : index
    %10 = vector.load %arg4[%c0_7, %c0_8] : memref<8x128xf32, #tpu.memory_space<vmem>>, vector<8x128xf32>
    %11 = arith.addf %9, %10 : vector<8x128xf32>
    %c0_9 = arith.constant 0 : index
    %c0_10 = arith.constant 0 : index
    %c0_11 = arith.constant 0 : index
    %12 = vector.load %arg5[%c0_9, %c0_10, %c0_11] : memref<1x8x128xf32, #tpu.memory_space<vmem>>, vector<1x8x128xf32>
    %13 = vector.shape_cast %12 : vector<1x8x128xf32> to vector<8x128xf32>
    %14 = vector.shape_cast %11 : vector<8x128xf32> to vector<1x8x128xf32>
    tpu.vector_store %arg5[%c0_9, %c0_10, %c0_11], %14 {strides = array<i32>} : memref<1x8x128xf32, #tpu.memory_space<vmem>>, vector<1x8x128xf32>,
    return
  }
  func.func @transform_0(%arg0: i32) -> (i32, i32, i32) {
    %c0_i32 = arith.constant 0 : i32
    %c0_i32_0 = arith.constant 0 : i32
    %c0_i32_1 = arith.constant 0 : i32
    return %arg0, %c0_i32, %c0_i32_0 : i32, i32, i32
  }
  func.func @transform_1(%arg0: i32) -> (i32, i32) {
    %c0_i32 = arith.constant 0 : i32
    %c0_i32_0 = arith.constant 0 : i32
    %c0_i32_1 = arith.constant 0 : i32
    return %c0_i32, %c0_i32_0 : i32, i32
  }
  func.func @transform_2(%arg0: i32) -> (i32, i32) {
    %c0_i32 = arith.constant 0 : i32
    %c0_i32_0 = arith.constant 0 : i32
    %c0_i32_1 = arith.constant 0 : i32
    return %c0_i32, %c0_i32_0 : i32, i32
  }
  func.func @transform_3(%arg0: i32) -> (i32, i32) {
    %c0_i32 = arith.constant 0 : i32
    %c0_i32_0 = arith.constant 0 : i32
    %c0_i32_1 = arith.constant 0 : i32
    return %c0_i32, %c0_i32_0 : i32, i32
  }
  func.func @transform_4(%arg0: i32) -> (i32, i32, i32) {
    %c0_i32 = arith.constant 0 : i32
    %c0_i32_0 = arith.constant 0 : i32
    %c0_i32_1 = arith.constant 0 : i32
    return %arg0, %c0_i32, %c0_i32_0 : i32, i32, i32
  }
}

module attributes {stable_mosaic.version = 11 : i64} {
  func.func @_encoder_layer_kernel(%arg0: i32, %arg1: memref<1x8x128xf32, #tpu.memory_space<vmem>>, %arg2: memref<128x384xbf16, #tpu.memory_space<vmem>>, %arg3: memref<1x384xf32, #tpu.memory_space<vmem>>, %arg4: memref<128x128xbf16, #tpu.memory_space<vmem>>, %arg5: memref<1x128xf32, #tpu.memory_space<vmem>>, %arg6: memref<1x128xf32, #tpu.memory_space<vmem>>, %arg7: memref<1x128xf32, #tpu.memory_space<vmem>>, %arg8: memref<128x256xbf16, #tpu.memory_space<vmem>>, %arg9: memref<1x256xf32, #tpu.memory_space<vmem>>, %arg10: memref<256x128xbf16, #tpu.memory_space<vmem>>, %arg11: memref<1x128xf32, #tpu.memory_space<vmem>>, %arg12: memref<1x128xf32, #tpu.memory_space<vmem>>, %arg13: memref<1x128xf32, #tpu.memory_space<vmem>>, %arg14: memref<1x8x128xf32, #tpu.memory_space<vmem>>) attributes {dimension_semantics = [#tpu.dimension_semantics<parallel>], iteration_bounds = array<i64: 2>, scalar_prefetch = 0 : i64, scratch_operands = 0 : i64, tpu.core_type = #tpu.core_type<tc>, window_params = [{transform_indices = @transform_0, window_bounds = array<i64: 1, 8, 128>}, {pipeline_mode = #tpu.pipeline_mode<synchronous>, transform_indices = @transform_1, window_bounds = array<i64: 128, 384>}, {pipeline_mode = #tpu.pipeline_mode<synchronous>, transform_indices = @transform_2, window_bounds = array<i64: 1, 384>}, {pipeline_mode = #tpu.pipeline_mode<synchronous>, transform_indices = @transform_3, window_bounds = array<i64: 128, 128>}, {pipeline_mode = #tpu.pipeline_mode<synchronous>, transform_indices = @transform_4, window_bounds = array<i64: 1, 128>}, {pipeline_mode = #tpu.pipeline_mode<synchronous>, transform_indices = @transform_5, window_bounds = array<i64: 1, 128>}, {pipeline_mode = #tpu.pipeline_mode<synchronous>, transform_indices = @transform_6, window_bounds = array<i64: 1, 128>}, {pipeline_mode = #tpu.pipeline_mode<synchronous>, transform_indices = @transform_7, window_bounds = array<i64: 128, 256>}, {pipeline_mode = #tpu.pipeline_mode<synchronous>, transform_indices = @transform_8, window_bounds = array<i64: 1, 256>}, {pipeline_mode = #tpu.pipeline_mode<synchronous>, transform_indices = @transform_9, window_bounds = array<i64: 256, 128>}, {pipeline_mode = #tpu.pipeline_mode<synchronous>, transform_indices = @transform_10, window_bounds = array<i64: 1, 128>}, {pipeline_mode = #tpu.pipeline_mode<synchronous>, transform_indices = @transform_11, window_bounds = array<i64: 1, 128>}, {pipeline_mode = #tpu.pipeline_mode<synchronous>, transform_indices = @transform_12, window_bounds = array<i64: 1, 128>}, {transform_indices = @transform_13, window_bounds = array<i64: 1, 8, 128>}]} {
    %c0 = arith.constant 0 : index
    %c0_0 = arith.constant 0 : index
    %c0_1 = arith.constant 0 : index
    %0 = vector.load %arg1[%c0, %c0_0, %c0_1] : memref<1x8x128xf32, #tpu.memory_space<vmem>>, vector<1x8x128xf32>
    %1 = vector.shape_cast %0 : vector<1x8x128xf32> to vector<8x128xf32>
    %2 = arith.truncf %1 : vector<8x128xf32> to vector<8x128xbf16>
    %c0_2 = arith.constant 0 : index
    %c0_3 = arith.constant 0 : index
    %3 = vector.load %arg2[%c0_2, %c0_3] : memref<128x384xbf16, #tpu.memory_space<vmem>>, vector<128x384xbf16>
    %cst = arith.constant dense<0.000000e+00> : vector<8x384xf32>
    %4 = tpu.matmul %2, %3, %cst {dimension_numbers = #tpu.dot_dimension_numbers<[1], [0], [0], [1], [0, 0, 1, 1], [], []>} : vector<8x128xbf16>, vector<128x384xbf16>, vector<8x384xf32> -> vector<8x384xf32>
    %c0_4 = arith.constant 0 : index
    %c0_5 = arith.constant 0 : index
    %5 = vector.load %arg3[%c0_4, %c0_5] : memref<1x384xf32, #tpu.memory_space<vmem>>, vector<1x384xf32>
    %6 = vector.broadcast %5 : vector<1x384xf32> to vector<8x384xf32>
    %7 = arith.addf %4, %6 : vector<8x384xf32>
    %8 = vector.extract_strided_slice %7 {offsets = [0, 0], sizes = [8, 128], strides = [1, 1]} : vector<8x384xf32> to vector<8x128xf32>
    %9 = vector.extract_strided_slice %7 {offsets = [0, 128], sizes = [8, 128], strides = [1, 1]} : vector<8x384xf32> to vector<8x128xf32>
    %10 = vector.extract_strided_slice %7 {offsets = [0, 256], sizes = [8, 128], strides = [1, 1]} : vector<8x384xf32> to vector<8x128xf32>
    %11 = vector.extract_strided_slice %8 {offsets = [0, 0], sizes = [8, 32], strides = [1, 1]} : vector<8x128xf32> to vector<8x32xf32>
    %12 = arith.truncf %11 : vector<8x32xf32> to vector<8x32xbf16>
    %13 = vector.extract_strided_slice %9 {offsets = [0, 0], sizes = [8, 32], strides = [1, 1]} : vector<8x128xf32> to vector<8x32xf32>
    %14 = arith.truncf %13 : vector<8x32xf32> to vector<8x32xbf16>
    %15 = vector.extract_strided_slice %10 {offsets = [0, 0], sizes = [8, 32], strides = [1, 1]} : vector<8x128xf32> to vector<8x32xf32>
    %16 = arith.truncf %15 : vector<8x32xf32> to vector<8x32xbf16>
    %cst_6 = arith.constant dense<0.000000e+00> : vector<8x8xf32>
    %17 = tpu.matmul %12, %14, %cst_6 {dimension_numbers = #tpu.dot_dimension_numbers<[1], [1], [0], [0], [0, 0, 1, 0], [], []>} : vector<8x32xbf16>, vector<8x32xbf16>, vector<8x8xf32> -> vector<8x8xf32>
    %cst_7 = arith.constant 0.176776692 : f32
    %18 = vector.broadcast %cst_7 : f32 to vector<8x8xf32>
    %19 = arith.mulf %17, %18 : vector<8x8xf32>
    %cst_8 = arith.constant dense<0xFF800000> : vector<8xf32>
    %20 = vector.multi_reduction <maximumf>, %19, %cst_8 [1] : vector<8x8xf32> to vector<8xf32>
    %21 = vector.shape_cast %20 : vector<8xf32> to vector<8x1xf32>
    %22 = vector.broadcast %21 : vector<8x1xf32> to vector<8x8xf32>
    %23 = arith.subf %19, %22 : vector<8x8xf32>
    %24 = math.exp %23 : vector<8x8xf32>
    %cst_9 = arith.constant dense<0.000000e+00> : vector<8xf32>
    %25 = vector.multi_reduction <add>, %24, %cst_9 [1] : vector<8x8xf32> to vector<8xf32>
    %26 = vector.shape_cast %25 : vector<8xf32> to vector<8x1xf32>
    %27 = tpu.reciprocal %26 {approx = true} : vector<8x1xf32> -> vector<8x1xf32>
    %28 = vector.broadcast %27 : vector<8x1xf32> to vector<8x8xf32>
    %29 = arith.mulf %24, %28 : vector<8x8xf32>
    %30 = arith.truncf %29 : vector<8x8xf32> to vector<8x8xbf16>
    %cst_10 = arith.constant dense<0.000000e+00> : vector<8x32xf32>
    %31 = tpu.matmul %30, %16, %cst_10 {dimension_numbers = #tpu.dot_dimension_numbers<[1], [0], [0], [1], [0, 0, 1, 1], [], []>} : vector<8x8xbf16>, vector<8x32xbf16>, vector<8x32xf32> -> vector<8x32xf32>
    %32 = arith.truncf %31 : vector<8x32xf32> to vector<8x32xbf16>
    %c0_11 = arith.constant 0 : index
    %c0_12 = arith.constant 0 : index
    %33 = vector.load %arg4[%c0_11, %c0_12] : memref<128x128xbf16, #tpu.memory_space<vmem>>, vector<32x128xbf16>
    %cst_13 = arith.constant dense<0.000000e+00> : vector<8x128xf32>
    %34 = tpu.matmul %32, %33, %cst_13 {dimension_numbers = #tpu.dot_dimension_numbers<[1], [0], [0], [1], [0, 0, 1, 1], [], []>} : vector<8x32xbf16>, vector<32x128xbf16>, vector<8x128xf32> -> vector<8x128xf32>
    %35 = vector.extract_strided_slice %8 {offsets = [0, 32], sizes = [8, 32], strides = [1, 1]} : vector<8x128xf32> to vector<8x32xf32>
    %36 = arith.truncf %35 : vector<8x32xf32> to vector<8x32xbf16>
    %37 = vector.extract_strided_slice %9 {offsets = [0, 32], sizes = [8, 32], strides = [1, 1]} : vector<8x128xf32> to vector<8x32xf32>
    %38 = arith.truncf %37 : vector<8x32xf32> to vector<8x32xbf16>
    %39 = vector.extract_strided_slice %10 {offsets = [0, 32], sizes = [8, 32], strides = [1, 1]} : vector<8x128xf32> to vector<8x32xf32>
    %40 = arith.truncf %39 : vector<8x32xf32> to vector<8x32xbf16>
    %cst_14 = arith.constant dense<0.000000e+00> : vector<8x8xf32>
    %41 = tpu.matmul %36, %38, %cst_14 {dimension_numbers = #tpu.dot_dimension_numbers<[1], [1], [0], [0], [0, 0, 1, 0], [], []>} : vector<8x32xbf16>, vector<8x32xbf16>, vector<8x8xf32> -> vector<8x8xf32>
    %cst_15 = arith.constant 0.176776692 : f32
    %42 = vector.broadcast %cst_15 : f32 to vector<8x8xf32>
    %43 = arith.mulf %41, %42 : vector<8x8xf32>
    %cst_16 = arith.constant dense<0xFF800000> : vector<8xf32>
    %44 = vector.multi_reduction <maximumf>, %43, %cst_16 [1] : vector<8x8xf32> to vector<8xf32>
    %45 = vector.shape_cast %44 : vector<8xf32> to vector<8x1xf32>
    %46 = vector.broadcast %45 : vector<8x1xf32> to vector<8x8xf32>
    %47 = arith.subf %43, %46 : vector<8x8xf32>
    %48 = math.exp %47 : vector<8x8xf32>
    %cst_17 = arith.constant dense<0.000000e+00> : vector<8xf32>
    %49 = vector.multi_reduction <add>, %48, %cst_17 [1] : vector<8x8xf32> to vector<8xf32>
    %50 = vector.shape_cast %49 : vector<8xf32> to vector<8x1xf32>
    %51 = tpu.reciprocal %50 {approx = true} : vector<8x1xf32> -> vector<8x1xf32>
    %52 = vector.broadcast %51 : vector<8x1xf32> to vector<8x8xf32>
    %53 = arith.mulf %48, %52 : vector<8x8xf32>
    %54 = arith.truncf %53 : vector<8x8xf32> to vector<8x8xbf16>
    %cst_18 = arith.constant dense<0.000000e+00> : vector<8x32xf32>
    %55 = tpu.matmul %54, %40, %cst_18 {dimension_numbers = #tpu.dot_dimension_numbers<[1], [0], [0], [1], [0, 0, 1, 1], [], []>} : vector<8x8xbf16>, vector<8x32xbf16>, vector<8x32xf32> -> vector<8x32xf32>
    %56 = arith.truncf %55 : vector<8x32xf32> to vector<8x32xbf16>
    %c32 = arith.constant 32 : index
    %c0_19 = arith.constant 0 : index
    %57 = vector.load %arg4[%c32, %c0_19] : memref<128x128xbf16, #tpu.memory_space<vmem>>, vector<32x128xbf16>
    %cst_20 = arith.constant dense<0.000000e+00> : vector<8x128xf32>
    %58 = tpu.matmul %56, %57, %cst_20 {dimension_numbers = #tpu.dot_dimension_numbers<[1], [0], [0], [1], [0, 0, 1, 1], [], []>} : vector<8x32xbf16>, vector<32x128xbf16>, vector<8x128xf32> -> vector<8x128xf32>
    %59 = arith.addf %34, %58 : vector<8x128xf32>
    %60 = vector.extract_strided_slice %8 {offsets = [0, 64], sizes = [8, 32], strides = [1, 1]} : vector<8x128xf32> to vector<8x32xf32>
    %61 = arith.truncf %60 : vector<8x32xf32> to vector<8x32xbf16>
    %62 = vector.extract_strided_slice %9 {offsets = [0, 64], sizes = [8, 32], strides = [1, 1]} : vector<8x128xf32> to vector<8x32xf32>
    %63 = arith.truncf %62 : vector<8x32xf32> to vector<8x32xbf16>
    %64 = vector.extract_strided_slice %10 {offsets = [0, 64], sizes = [8, 32], strides = [1, 1]} : vector<8x128xf32> to vector<8x32xf32>
    %65 = arith.truncf %64 : vector<8x32xf32> to vector<8x32xbf16>
    %cst_21 = arith.constant dense<0.000000e+00> : vector<8x8xf32>
    %66 = tpu.matmul %61, %63, %cst_21 {dimension_numbers = #tpu.dot_dimension_numbers<[1], [1], [0], [0], [0, 0, 1, 0], [], []>} : vector<8x32xbf16>, vector<8x32xbf16>, vector<8x8xf32> -> vector<8x8xf32>
    %cst_22 = arith.constant 0.176776692 : f32
    %67 = vector.broadcast %cst_22 : f32 to vector<8x8xf32>
    %68 = arith.mulf %66, %67 : vector<8x8xf32>
    %cst_23 = arith.constant dense<0xFF800000> : vector<8xf32>
    %69 = vector.multi_reduction <maximumf>, %68, %cst_23 [1] : vector<8x8xf32> to vector<8xf32>
    %70 = vector.shape_cast %69 : vector<8xf32> to vector<8x1xf32>
    %71 = vector.broadcast %70 : vector<8x1xf32> to vector<8x8xf32>
    %72 = arith.subf %68, %71 : vector<8x8xf32>
    %73 = math.exp %72 : vector<8x8xf32>
    %cst_24 = arith.constant dense<0.000000e+00> : vector<8xf32>
    %74 = vector.multi_reduction <add>, %73, %cst_24 [1] : vector<8x8xf32> to vector<8xf32>
    %75 = vector.shape_cast %74 : vector<8xf32> to vector<8x1xf32>
    %76 = tpu.reciprocal %75 {approx = true} : vector<8x1xf32> -> vector<8x1xf32>
    %77 = vector.broadcast %76 : vector<8x1xf32> to vector<8x8xf32>
    %78 = arith.mulf %73, %77 : vector<8x8xf32>
    %79 = arith.truncf %78 : vector<8x8xf32> to vector<8x8xbf16>
    %cst_25 = arith.constant dense<0.000000e+00> : vector<8x32xf32>
    %80 = tpu.matmul %79, %65, %cst_25 {dimension_numbers = #tpu.dot_dimension_numbers<[1], [0], [0], [1], [0, 0, 1, 1], [], []>} : vector<8x8xbf16>, vector<8x32xbf16>, vector<8x32xf32> -> vector<8x32xf32>
    %81 = arith.truncf %80 : vector<8x32xf32> to vector<8x32xbf16>
    %c64 = arith.constant 64 : index
    %c0_26 = arith.constant 0 : index
    %82 = vector.load %arg4[%c64, %c0_26] : memref<128x128xbf16, #tpu.memory_space<vmem>>, vector<32x128xbf16>
    %cst_27 = arith.constant dense<0.000000e+00> : vector<8x128xf32>
    %83 = tpu.matmul %81, %82, %cst_27 {dimension_numbers = #tpu.dot_dimension_numbers<[1], [0], [0], [1], [0, 0, 1, 1], [], []>} : vector<8x32xbf16>, vector<32x128xbf16>, vector<8x128xf32> -> vector<8x128xf32>
    %84 = arith.addf %59, %83 : vector<8x128xf32>
    %85 = vector.extract_strided_slice %8 {offsets = [0, 96], sizes = [8, 32], strides = [1, 1]} : vector<8x128xf32> to vector<8x32xf32>
    %86 = arith.truncf %85 : vector<8x32xf32> to vector<8x32xbf16>
    %87 = vector.extract_strided_slice %9 {offsets = [0, 96], sizes = [8, 32], strides = [1, 1]} : vector<8x128xf32> to vector<8x32xf32>
    %88 = arith.truncf %87 : vector<8x32xf32> to vector<8x32xbf16>
    %89 = vector.extract_strided_slice %10 {offsets = [0, 96], sizes = [8, 32], strides = [1, 1]} : vector<8x128xf32> to vector<8x32xf32>
    %90 = arith.truncf %89 : vector<8x32xf32> to vector<8x32xbf16>
    %cst_28 = arith.constant dense<0.000000e+00> : vector<8x8xf32>
    %91 = tpu.matmul %86, %88, %cst_28 {dimension_numbers = #tpu.dot_dimension_numbers<[1], [1], [0], [0], [0, 0, 1, 0], [], []>} : vector<8x32xbf16>, vector<8x32xbf16>, vector<8x8xf32> -> vector<8x8xf32>
    %cst_29 = arith.constant 0.176776692 : f32
    %92 = vector.broadcast %cst_29 : f32 to vector<8x8xf32>
    %93 = arith.mulf %91, %92 : vector<8x8xf32>
    %cst_30 = arith.constant dense<0xFF800000> : vector<8xf32>
    %94 = vector.multi_reduction <maximumf>, %93, %cst_30 [1] : vector<8x8xf32> to vector<8xf32>
    %95 = vector.shape_cast %94 : vector<8xf32> to vector<8x1xf32>
    %96 = vector.broadcast %95 : vector<8x1xf32> to vector<8x8xf32>
    %97 = arith.subf %93, %96 : vector<8x8xf32>
    %98 = math.exp %97 : vector<8x8xf32>
    %cst_31 = arith.constant dense<0.000000e+00> : vector<8xf32>
    %99 = vector.multi_reduction <add>, %98, %cst_31 [1] : vector<8x8xf32> to vector<8xf32>
    %100 = vector.shape_cast %99 : vector<8xf32> to vector<8x1xf32>
    %101 = tpu.reciprocal %100 {approx = true} : vector<8x1xf32> -> vector<8x1xf32>
    %102 = vector.broadcast %101 : vector<8x1xf32> to vector<8x8xf32>
    %103 = arith.mulf %98, %102 : vector<8x8xf32>
    %104 = arith.truncf %103 : vector<8x8xf32> to vector<8x8xbf16>
    %cst_32 = arith.constant dense<0.000000e+00> : vector<8x32xf32>
    %105 = tpu.matmul %104, %90, %cst_32 {dimension_numbers = #tpu.dot_dimension_numbers<[1], [0], [0], [1], [0, 0, 1, 1], [], []>} : vector<8x8xbf16>, vector<8x32xbf16>, vector<8x32xf32> -> vector<8x32xf32>
    %106 = arith.truncf %105 : vector<8x32xf32> to vector<8x32xbf16>
    %c96 = arith.constant 96 : index
    %c0_33 = arith.constant 0 : index
    %107 = vector.load %arg4[%c96, %c0_33] : memref<128x128xbf16, #tpu.memory_space<vmem>>, vector<32x128xbf16>
    %cst_34 = arith.constant dense<0.000000e+00> : vector<8x128xf32>
    %108 = tpu.matmul %106, %107, %cst_34 {dimension_numbers = #tpu.dot_dimension_numbers<[1], [0], [0], [1], [0, 0, 1, 1], [], []>} : vector<8x32xbf16>, vector<32x128xbf16>, vector<8x128xf32> -> vector<8x128xf32>
    %109 = arith.addf %84, %108 : vector<8x128xf32>
    %c0_35 = arith.constant 0 : index
    %c0_36 = arith.constant 0 : index
    %110 = vector.load %arg5[%c0_35, %c0_36] : memref<1x128xf32, #tpu.memory_space<vmem>>, vector<1x128xf32>
    %111 = vector.broadcast %110 : vector<1x128xf32> to vector<8x128xf32>
    %112 = arith.addf %109, %111 : vector<8x128xf32>
    %113 = arith.addf %1, %112 : vector<8x128xf32>
    %c0_37 = arith.constant 0 : index
    %c0_38 = arith.constant 0 : index
    %114 = vector.load %arg6[%c0_37, %c0_38] : memref<1x128xf32, #tpu.memory_space<vmem>>, vector<1x128xf32>
    %c0_39 = arith.constant 0 : index
    %c0_40 = arith.constant 0 : index
    %115 = vector.load %arg7[%c0_39, %c0_40] : memref<1x128xf32, #tpu.memory_space<vmem>>, vector<1x128xf32>
    %cst_41 = arith.constant dense<0.000000e+00> : vector<8xf32>
    %116 = vector.multi_reduction <add>, %113, %cst_41 [1] : vector<8x128xf32> to vector<8xf32>
    %117 = vector.shape_cast %116 : vector<8xf32> to vector<8x1xf32>
    %cst_42 = arith.constant 1.280000e+02 : f32
    %118 = vector.broadcast %cst_42 : f32 to vector<8x1xf32>
    %119 = arith.divf %117, %118 : vector<8x1xf32>
    %120 = vector.broadcast %119 : vector<8x1xf32> to vector<8x128xf32>
    %121 = arith.subf %113, %120 : vector<8x128xf32>
    %122 = arith.mulf %121, %121 : vector<8x128xf32>
    %cst_43 = arith.constant dense<0.000000e+00> : vector<8xf32>
    %123 = vector.multi_reduction <add>, %122, %cst_43 [1] : vector<8x128xf32> to vector<8xf32>
    %124 = vector.shape_cast %123 : vector<8xf32> to vector<8x1xf32>
    %cst_44 = arith.constant 1.280000e+02 : f32
    %125 = vector.broadcast %cst_44 : f32 to vector<8x1xf32>
    %126 = arith.divf %124, %125 : vector<8x1xf32>
    %127 = vector.broadcast %119 : vector<8x1xf32> to vector<8x128xf32>
    %128 = arith.subf %113, %127 : vector<8x128xf32>
    %cst_45 = arith.constant 9.99999974E-6 : f32
    %129 = vector.broadcast %cst_45 : f32 to vector<8x1xf32>
    %130 = arith.addf %126, %129 : vector<8x1xf32>
    %131 = math.rsqrt %130 : vector<8x1xf32>
    %132 = vector.broadcast %131 : vector<8x1xf32> to vector<8x128xf32>
    %133 = arith.mulf %128, %132 : vector<8x128xf32>
    %134 = vector.broadcast %114 : vector<1x128xf32> to vector<8x128xf32>
    %135 = arith.mulf %133, %134 : vector<8x128xf32>
    %136 = vector.broadcast %115 : vector<1x128xf32> to vector<8x128xf32>
    %137 = arith.addf %135, %136 : vector<8x128xf32>
    %138 = arith.truncf %137 : vector<8x128xf32> to vector<8x128xbf16>
    %c0_46 = arith.constant 0 : index
    %c0_47 = arith.constant 0 : index
    %139 = vector.load %arg8[%c0_46, %c0_47] : memref<128x256xbf16, #tpu.memory_space<vmem>>, vector<128x256xbf16>
    %cst_48 = arith.constant dense<0.000000e+00> : vector<8x256xf32>
    %140 = tpu.matmul %138, %139, %cst_48 {dimension_numbers = #tpu.dot_dimension_numbers<[1], [0], [0], [1], [0, 0, 1, 1], [], []>} : vector<8x128xbf16>, vector<128x256xbf16>, vector<8x256xf32> -> vector<8x256xf32>
    %c0_49 = arith.constant 0 : index
    %c0_50 = arith.constant 0 : index
    %141 = vector.load %arg9[%c0_49, %c0_50] : memref<1x256xf32, #tpu.memory_space<vmem>>, vector<1x256xf32>
    %142 = vector.broadcast %141 : vector<1x256xf32> to vector<8x256xf32>
    %143 = arith.addf %140, %142 : vector<8x256xf32>
    %cst_51 = arith.constant 0.000000e+00 : f32
    %144 = vector.broadcast %cst_51 : f32 to vector<8x256xf32>
    %145 = arith.maximumf %143, %144 : vector<8x256xf32>
    %146 = arith.truncf %145 : vector<8x256xf32> to vector<8x256xbf16>
    %c0_52 = arith.constant 0 : index
    %c0_53 = arith.constant 0 : index
    %147 = vector.load %arg10[%c0_52, %c0_53] : memref<256x128xbf16, #tpu.memory_space<vmem>>, vector<256x128xbf16>
    %cst_54 = arith.constant dense<0.000000e+00> : vector<8x128xf32>
    %148 = tpu.matmul %146, %147, %cst_54 {dimension_numbers = #tpu.dot_dimension_numbers<[1], [0], [0], [1], [0, 0, 1, 1], [], []>} : vector<8x256xbf16>, vector<256x128xbf16>, vector<8x128xf32> -> vector<8x128xf32>
    %c0_55 = arith.constant 0 : index
    %c0_56 = arith.constant 0 : index
    %149 = vector.load %arg11[%c0_55, %c0_56] : memref<1x128xf32, #tpu.memory_space<vmem>>, vector<1x128xf32>
    %150 = vector.broadcast %149 : vector<1x128xf32> to vector<8x128xf32>
    %151 = arith.addf %148, %150 : vector<8x128xf32>
    %152 = arith.addf %137, %151 : vector<8x128xf32>
    %c0_57 = arith.constant 0 : index
    %c0_58 = arith.constant 0 : index
    %153 = vector.load %arg12[%c0_57, %c0_58] : memref<1x128xf32, #tpu.memory_space<vmem>>, vector<1x128xf32>
    %c0_59 = arith.constant 0 : index
    %c0_60 = arith.constant 0 : index
    %154 = vector.load %arg13[%c0_59, %c0_60] : memref<1x128xf32, #tpu.memory_space<vmem>>, vector<1x128xf32>
    %cst_61 = arith.constant dense<0.000000e+00> : vector<8xf32>
    %155 = vector.multi_reduction <add>, %152, %cst_61 [1] : vector<8x128xf32> to vector<8xf32>
    %156 = vector.shape_cast %155 : vector<8xf32> to vector<8x1xf32>
    %cst_62 = arith.constant 1.280000e+02 : f32
    %157 = vector.broadcast %cst_62 : f32 to vector<8x1xf32>
    %158 = arith.divf %156, %157 : vector<8x1xf32>
    %159 = vector.broadcast %158 : vector<8x1xf32> to vector<8x128xf32>
    %160 = arith.subf %152, %159 : vector<8x128xf32>
    %161 = arith.mulf %160, %160 : vector<8x128xf32>
    %cst_63 = arith.constant dense<0.000000e+00> : vector<8xf32>
    %162 = vector.multi_reduction <add>, %161, %cst_63 [1] : vector<8x128xf32> to vector<8xf32>
    %163 = vector.shape_cast %162 : vector<8xf32> to vector<8x1xf32>
    %cst_64 = arith.constant 1.280000e+02 : f32
    %164 = vector.broadcast %cst_64 : f32 to vector<8x1xf32>
    %165 = arith.divf %163, %164 : vector<8x1xf32>
    %166 = vector.broadcast %158 : vector<8x1xf32> to vector<8x128xf32>
    %167 = arith.subf %152, %166 : vector<8x128xf32>
    %cst_65 = arith.constant 9.99999974E-6 : f32
    %168 = vector.broadcast %cst_65 : f32 to vector<8x1xf32>
    %169 = arith.addf %165, %168 : vector<8x1xf32>
    %170 = math.rsqrt %169 : vector<8x1xf32>
    %171 = vector.broadcast %170 : vector<8x1xf32> to vector<8x128xf32>
    %172 = arith.mulf %167, %171 : vector<8x128xf32>
    %173 = vector.broadcast %153 : vector<1x128xf32> to vector<8x128xf32>
    %174 = arith.mulf %172, %173 : vector<8x128xf32>
    %175 = vector.broadcast %154 : vector<1x128xf32> to vector<8x128xf32>
    %176 = arith.addf %174, %175 : vector<8x128xf32>
    %c0_66 = arith.constant 0 : index
    %c0_67 = arith.constant 0 : index
    %c0_68 = arith.constant 0 : index
    %177 = vector.load %arg14[%c0_66, %c0_67, %c0_68] : memref<1x8x128xf32, #tpu.memory_space<vmem>>, vector<1x8x128xf32>
    %178 = vector.shape_cast %177 : vector<1x8x128xf32> to vector<8x128xf32>
    %179 = vector.shape_cast %176 : vector<8x128xf32> to vector<1x8x128xf32>
    tpu.vector_store %arg14[%c0_66, %c0_67, %c0_68], %179 {strides = array<i32>} : memref<1x8x128xf32, #tpu.memory_space<vmem>>, vector<1x8x128xf32>,
    return
  }
  func.func @transform_0(%arg0: i32) -> (i32, i32, i32) {
    %c0_i32 = arith.constant 0 : i32
    %c0_i32_0 = arith.constant 0 : i32
    %c0_i32_1 = arith.constant 0 : i32
    return %arg0, %c0_i32, %c0_i32_0 : i32, i32, i32
  }
  func.func @transform_1(%arg0: i32) -> (i32, i32) {
    %c0_i32 = arith.constant 0 : i32
    %c0_i32_0 = arith.constant 0 : i32
    %c0_i32_1 = arith.constant 0 : i32
    return %c0_i32, %c0_i32_0 : i32, i32
  }
  func.func @transform_2(%arg0: i32) -> (i32, i32) {
    %c0_i32 = arith.constant 0 : i32
    %c0_i32_0 = arith.constant 0 : i32
    %c0_i32_1 = arith.constant 0 : i32
    return %c0_i32, %c0_i32_0 : i32, i32
  }
  func.func @transform_3(%arg0: i32) -> (i32, i32) {
    %c0_i32 = arith.constant 0 : i32
    %c0_i32_0 = arith.constant 0 : i32
    %c0_i32_1 = arith.constant 0 : i32
    return %c0_i32, %c0_i32_0 : i32, i32
  }
  func.func @transform_4(%arg0: i32) -> (i32, i32) {
    %c0_i32 = arith.constant 0 : i32
    %c0_i32_0 = arith.constant 0 : i32
    %c0_i32_1 = arith.constant 0 : i32
    return %c0_i32, %c0_i32_0 : i32, i32
  }
  func.func @transform_5(%arg0: i32) -> (i32, i32) {
    %c0_i32 = arith.constant 0 : i32
    %c0_i32_0 = arith.constant 0 : i32
    %c0_i32_1 = arith.constant 0 : i32
    return %c0_i32, %c0_i32_0 : i32, i32
  }
  func.func @transform_6(%arg0: i32) -> (i32, i32) {
    %c0_i32 = arith.constant 0 : i32
    %c0_i32_0 = arith.constant 0 : i32
    %c0_i32_1 = arith.constant 0 : i32
    return %c0_i32, %c0_i32_0 : i32, i32
  }
  func.func @transform_7(%arg0: i32) -> (i32, i32) {
    %c0_i32 = arith.constant 0 : i32
    %c0_i32_0 = arith.constant 0 : i32
    %c0_i32_1 = arith.constant 0 : i32
    return %c0_i32, %c0_i32_0 : i32, i32
  }
  func.func @transform_8(%arg0: i32) -> (i32, i32) {
    %c0_i32 = arith.constant 0 : i32
    %c0_i32_0 = arith.constant 0 : i32
    %c0_i32_1 = arith.constant 0 : i32
    return %c0_i32, %c0_i32_0 : i32, i32
  }
  func.func @transform_9(%arg0: i32) -> (i32, i32) {
    %c0_i32 = arith.constant 0 : i32
    %c0_i32_0 = arith.constant 0 : i32
    %c0_i32_1 = arith.constant 0 : i32
    return %c0_i32, %c0_i32_0 : i32, i32
  }
  func.func @transform_10(%arg0: i32) -> (i32, i32) {
    %c0_i32 = arith.constant 0 : i32
    %c0_i32_0 = arith.constant 0 : i32
    %c0_i32_1 = arith.constant 0 : i32
    return %c0_i32, %c0_i32_0 : i32, i32
  }
  func.func @transform_11(%arg0: i32) -> (i32, i32) {
    %c0_i32 = arith.constant 0 : i32
    %c0_i32_0 = arith.constant 0 : i32
    %c0_i32_1 = arith.constant 0 : i32
    return %c0_i32, %c0_i32_0 : i32, i32
  }
  func.func @transform_12(%arg0: i32) -> (i32, i32) {
    %c0_i32 = arith.constant 0 : i32
    %c0_i32_0 = arith.constant 0 : i32
    %c0_i32_1 = arith.constant 0 : i32
    return %c0_i32, %c0_i32_0 : i32, i32
  }
  func.func @transform_13(%arg0: i32) -> (i32, i32, i32) {
    %c0_i32 = arith.constant 0 : i32
    %c0_i32_0 = arith.constant 0 : i32
    %c0_i32_1 = arith.constant 0 : i32
    return %arg0, %c0_i32, %c0_i32_0 : i32, i32, i32
  }
}

module attributes {stable_mosaic.version = 11 : i64} {
  func.func @_encoder_layer_kernel(%arg0: i32, %arg1: memref<1x8x128xf32, #tpu.memory_space<vmem>>, %arg2: memref<128x384xbf16, #tpu.memory_space<vmem>>, %arg3: memref<1x384xf32, #tpu.memory_space<vmem>>, %arg4: memref<128x128xbf16, #tpu.memory_space<vmem>>, %arg5: memref<1x128xf32, #tpu.memory_space<vmem>>, %arg6: memref<1x128xf32, #tpu.memory_space<vmem>>, %arg7: memref<1x128xf32, #tpu.memory_space<vmem>>, %arg8: memref<128x256xbf16, #tpu.memory_space<vmem>>, %arg9: memref<1x256xf32, #tpu.memory_space<vmem>>, %arg10: memref<256x128xbf16, #tpu.memory_space<vmem>>, %arg11: memref<1x128xf32, #tpu.memory_space<vmem>>, %arg12: memref<1x128xf32, #tpu.memory_space<vmem>>, %arg13: memref<1x128xf32, #tpu.memory_space<vmem>>, %arg14: memref<1x128xf32, #tpu.memory_space<vmem>>, %arg15: memref<1x128xf32, #tpu.memory_space<vmem>>, %arg16: memref<1x8x128xf32, #tpu.memory_space<vmem>>) attributes {dimension_semantics = [#tpu.dimension_semantics<parallel>], iteration_bounds = array<i64: 2>, scalar_prefetch = 0 : i64, scratch_operands = 0 : i64, tpu.core_type = #tpu.core_type<tc>, window_params = [{transform_indices = @transform_0, window_bounds = array<i64: 1, 8, 128>}, {pipeline_mode = #tpu.pipeline_mode<synchronous>, transform_indices = @transform_1, window_bounds = array<i64: 128, 384>}, {pipeline_mode = #tpu.pipeline_mode<synchronous>, transform_indices = @transform_2, window_bounds = array<i64: 1, 384>}, {pipeline_mode = #tpu.pipeline_mode<synchronous>, transform_indices = @transform_3, window_bounds = array<i64: 128, 128>}, {pipeline_mode = #tpu.pipeline_mode<synchronous>, transform_indices = @transform_4, window_bounds = array<i64: 1, 128>}, {pipeline_mode = #tpu.pipeline_mode<synchronous>, transform_indices = @transform_5, window_bounds = array<i64: 1, 128>}, {pipeline_mode = #tpu.pipeline_mode<synchronous>, transform_indices = @transform_6, window_bounds = array<i64: 1, 128>}, {pipeline_mode = #tpu.pipeline_mode<synchronous>, transform_indices = @transform_7, window_bounds = array<i64: 128, 256>}, {pipeline_mode = #tpu.pipeline_mode<synchronous>, transform_indices = @transform_8, window_bounds = array<i64: 1, 256>}, {pipeline_mode = #tpu.pipeline_mode<synchronous>, transform_indices = @transform_9, window_bounds = array<i64: 256, 128>}, {pipeline_mode = #tpu.pipeline_mode<synchronous>, transform_indices = @transform_10, window_bounds = array<i64: 1, 128>}, {pipeline_mode = #tpu.pipeline_mode<synchronous>, transform_indices = @transform_11, window_bounds = array<i64: 1, 128>}, {pipeline_mode = #tpu.pipeline_mode<synchronous>, transform_indices = @transform_12, window_bounds = array<i64: 1, 128>}, {pipeline_mode = #tpu.pipeline_mode<synchronous>, transform_indices = @transform_13, window_bounds = array<i64: 1, 128>}, {pipeline_mode = #tpu.pipeline_mode<synchronous>, transform_indices = @transform_14, window_bounds = array<i64: 1, 128>}, {transform_indices = @transform_15, window_bounds = array<i64: 1, 8, 128>}]} {
    %c0 = arith.constant 0 : index
    %c0_0 = arith.constant 0 : index
    %c0_1 = arith.constant 0 : index
    %0 = vector.load %arg1[%c0, %c0_0, %c0_1] : memref<1x8x128xf32, #tpu.memory_space<vmem>>, vector<1x8x128xf32>
    %1 = vector.shape_cast %0 : vector<1x8x128xf32> to vector<8x128xf32>
    %2 = arith.truncf %1 : vector<8x128xf32> to vector<8x128xbf16>
    %c0_2 = arith.constant 0 : index
    %c0_3 = arith.constant 0 : index
    %3 = vector.load %arg2[%c0_2, %c0_3] : memref<128x384xbf16, #tpu.memory_space<vmem>>, vector<128x384xbf16>
    %cst = arith.constant dense<0.000000e+00> : vector<8x384xf32>
    %4 = tpu.matmul %2, %3, %cst {dimension_numbers = #tpu.dot_dimension_numbers<[1], [0], [0], [1], [0, 0, 1, 1], [], []>} : vector<8x128xbf16>, vector<128x384xbf16>, vector<8x384xf32> -> vector<8x384xf32>
    %c0_4 = arith.constant 0 : index
    %c0_5 = arith.constant 0 : index
    %5 = vector.load %arg3[%c0_4, %c0_5] : memref<1x384xf32, #tpu.memory_space<vmem>>, vector<1x384xf32>
    %6 = vector.broadcast %5 : vector<1x384xf32> to vector<8x384xf32>
    %7 = arith.addf %4, %6 : vector<8x384xf32>
    %8 = vector.extract_strided_slice %7 {offsets = [0, 0], sizes = [8, 128], strides = [1, 1]} : vector<8x384xf32> to vector<8x128xf32>
    %9 = vector.extract_strided_slice %7 {offsets = [0, 128], sizes = [8, 128], strides = [1, 1]} : vector<8x384xf32> to vector<8x128xf32>
    %10 = vector.extract_strided_slice %7 {offsets = [0, 256], sizes = [8, 128], strides = [1, 1]} : vector<8x384xf32> to vector<8x128xf32>
    %11 = vector.extract_strided_slice %8 {offsets = [0, 0], sizes = [8, 32], strides = [1, 1]} : vector<8x128xf32> to vector<8x32xf32>
    %12 = arith.truncf %11 : vector<8x32xf32> to vector<8x32xbf16>
    %13 = vector.extract_strided_slice %9 {offsets = [0, 0], sizes = [8, 32], strides = [1, 1]} : vector<8x128xf32> to vector<8x32xf32>
    %14 = arith.truncf %13 : vector<8x32xf32> to vector<8x32xbf16>
    %15 = vector.extract_strided_slice %10 {offsets = [0, 0], sizes = [8, 32], strides = [1, 1]} : vector<8x128xf32> to vector<8x32xf32>
    %16 = arith.truncf %15 : vector<8x32xf32> to vector<8x32xbf16>
    %cst_6 = arith.constant dense<0.000000e+00> : vector<8x8xf32>
    %17 = tpu.matmul %12, %14, %cst_6 {dimension_numbers = #tpu.dot_dimension_numbers<[1], [1], [0], [0], [0, 0, 1, 0], [], []>} : vector<8x32xbf16>, vector<8x32xbf16>, vector<8x8xf32> -> vector<8x8xf32>
    %cst_7 = arith.constant 0.176776692 : f32
    %18 = vector.broadcast %cst_7 : f32 to vector<8x8xf32>
    %19 = arith.mulf %17, %18 : vector<8x8xf32>
    %cst_8 = arith.constant dense<0xFF800000> : vector<8xf32>
    %20 = vector.multi_reduction <maximumf>, %19, %cst_8 [1] : vector<8x8xf32> to vector<8xf32>
    %21 = vector.shape_cast %20 : vector<8xf32> to vector<8x1xf32>
    %22 = vector.broadcast %21 : vector<8x1xf32> to vector<8x8xf32>
    %23 = arith.subf %19, %22 : vector<8x8xf32>
    %24 = math.exp %23 : vector<8x8xf32>
    %cst_9 = arith.constant dense<0.000000e+00> : vector<8xf32>
    %25 = vector.multi_reduction <add>, %24, %cst_9 [1] : vector<8x8xf32> to vector<8xf32>
    %26 = vector.shape_cast %25 : vector<8xf32> to vector<8x1xf32>
    %27 = tpu.reciprocal %26 {approx = true} : vector<8x1xf32> -> vector<8x1xf32>
    %28 = vector.broadcast %27 : vector<8x1xf32> to vector<8x8xf32>
    %29 = arith.mulf %24, %28 : vector<8x8xf32>
    %30 = arith.truncf %29 : vector<8x8xf32> to vector<8x8xbf16>
    %cst_10 = arith.constant dense<0.000000e+00> : vector<8x32xf32>
    %31 = tpu.matmul %30, %16, %cst_10 {dimension_numbers = #tpu.dot_dimension_numbers<[1], [0], [0], [1], [0, 0, 1, 1], [], []>} : vector<8x8xbf16>, vector<8x32xbf16>, vector<8x32xf32> -> vector<8x32xf32>
    %32 = arith.truncf %31 : vector<8x32xf32> to vector<8x32xbf16>
    %c0_11 = arith.constant 0 : index
    %c0_12 = arith.constant 0 : index
    %33 = vector.load %arg4[%c0_11, %c0_12] : memref<128x128xbf16, #tpu.memory_space<vmem>>, vector<32x128xbf16>
    %cst_13 = arith.constant dense<0.000000e+00> : vector<8x128xf32>
    %34 = tpu.matmul %32, %33, %cst_13 {dimension_numbers = #tpu.dot_dimension_numbers<[1], [0], [0], [1], [0, 0, 1, 1], [], []>} : vector<8x32xbf16>, vector<32x128xbf16>, vector<8x128xf32> -> vector<8x128xf32>
    %35 = vector.extract_strided_slice %8 {offsets = [0, 32], sizes = [8, 32], strides = [1, 1]} : vector<8x128xf32> to vector<8x32xf32>
    %36 = arith.truncf %35 : vector<8x32xf32> to vector<8x32xbf16>
    %37 = vector.extract_strided_slice %9 {offsets = [0, 32], sizes = [8, 32], strides = [1, 1]} : vector<8x128xf32> to vector<8x32xf32>
    %38 = arith.truncf %37 : vector<8x32xf32> to vector<8x32xbf16>
    %39 = vector.extract_strided_slice %10 {offsets = [0, 32], sizes = [8, 32], strides = [1, 1]} : vector<8x128xf32> to vector<8x32xf32>
    %40 = arith.truncf %39 : vector<8x32xf32> to vector<8x32xbf16>
    %cst_14 = arith.constant dense<0.000000e+00> : vector<8x8xf32>
    %41 = tpu.matmul %36, %38, %cst_14 {dimension_numbers = #tpu.dot_dimension_numbers<[1], [1], [0], [0], [0, 0, 1, 0], [], []>} : vector<8x32xbf16>, vector<8x32xbf16>, vector<8x8xf32> -> vector<8x8xf32>
    %cst_15 = arith.constant 0.176776692 : f32
    %42 = vector.broadcast %cst_15 : f32 to vector<8x8xf32>
    %43 = arith.mulf %41, %42 : vector<8x8xf32>
    %cst_16 = arith.constant dense<0xFF800000> : vector<8xf32>
    %44 = vector.multi_reduction <maximumf>, %43, %cst_16 [1] : vector<8x8xf32> to vector<8xf32>
    %45 = vector.shape_cast %44 : vector<8xf32> to vector<8x1xf32>
    %46 = vector.broadcast %45 : vector<8x1xf32> to vector<8x8xf32>
    %47 = arith.subf %43, %46 : vector<8x8xf32>
    %48 = math.exp %47 : vector<8x8xf32>
    %cst_17 = arith.constant dense<0.000000e+00> : vector<8xf32>
    %49 = vector.multi_reduction <add>, %48, %cst_17 [1] : vector<8x8xf32> to vector<8xf32>
    %50 = vector.shape_cast %49 : vector<8xf32> to vector<8x1xf32>
    %51 = tpu.reciprocal %50 {approx = true} : vector<8x1xf32> -> vector<8x1xf32>
    %52 = vector.broadcast %51 : vector<8x1xf32> to vector<8x8xf32>
    %53 = arith.mulf %48, %52 : vector<8x8xf32>
    %54 = arith.truncf %53 : vector<8x8xf32> to vector<8x8xbf16>
    %cst_18 = arith.constant dense<0.000000e+00> : vector<8x32xf32>
    %55 = tpu.matmul %54, %40, %cst_18 {dimension_numbers = #tpu.dot_dimension_numbers<[1], [0], [0], [1], [0, 0, 1, 1], [], []>} : vector<8x8xbf16>, vector<8x32xbf16>, vector<8x32xf32> -> vector<8x32xf32>
    %56 = arith.truncf %55 : vector<8x32xf32> to vector<8x32xbf16>
    %c32 = arith.constant 32 : index
    %c0_19 = arith.constant 0 : index
    %57 = vector.load %arg4[%c32, %c0_19] : memref<128x128xbf16, #tpu.memory_space<vmem>>, vector<32x128xbf16>
    %cst_20 = arith.constant dense<0.000000e+00> : vector<8x128xf32>
    %58 = tpu.matmul %56, %57, %cst_20 {dimension_numbers = #tpu.dot_dimension_numbers<[1], [0], [0], [1], [0, 0, 1, 1], [], []>} : vector<8x32xbf16>, vector<32x128xbf16>, vector<8x128xf32> -> vector<8x128xf32>
    %59 = arith.addf %34, %58 : vector<8x128xf32>
    %60 = vector.extract_strided_slice %8 {offsets = [0, 64], sizes = [8, 32], strides = [1, 1]} : vector<8x128xf32> to vector<8x32xf32>
    %61 = arith.truncf %60 : vector<8x32xf32> to vector<8x32xbf16>
    %62 = vector.extract_strided_slice %9 {offsets = [0, 64], sizes = [8, 32], strides = [1, 1]} : vector<8x128xf32> to vector<8x32xf32>
    %63 = arith.truncf %62 : vector<8x32xf32> to vector<8x32xbf16>
    %64 = vector.extract_strided_slice %10 {offsets = [0, 64], sizes = [8, 32], strides = [1, 1]} : vector<8x128xf32> to vector<8x32xf32>
    %65 = arith.truncf %64 : vector<8x32xf32> to vector<8x32xbf16>
    %cst_21 = arith.constant dense<0.000000e+00> : vector<8x8xf32>
    %66 = tpu.matmul %61, %63, %cst_21 {dimension_numbers = #tpu.dot_dimension_numbers<[1], [1], [0], [0], [0, 0, 1, 0], [], []>} : vector<8x32xbf16>, vector<8x32xbf16>, vector<8x8xf32> -> vector<8x8xf32>
    %cst_22 = arith.constant 0.176776692 : f32
    %67 = vector.broadcast %cst_22 : f32 to vector<8x8xf32>
    %68 = arith.mulf %66, %67 : vector<8x8xf32>
    %cst_23 = arith.constant dense<0xFF800000> : vector<8xf32>
    %69 = vector.multi_reduction <maximumf>, %68, %cst_23 [1] : vector<8x8xf32> to vector<8xf32>
    %70 = vector.shape_cast %69 : vector<8xf32> to vector<8x1xf32>
    %71 = vector.broadcast %70 : vector<8x1xf32> to vector<8x8xf32>
    %72 = arith.subf %68, %71 : vector<8x8xf32>
    %73 = math.exp %72 : vector<8x8xf32>
    %cst_24 = arith.constant dense<0.000000e+00> : vector<8xf32>
    %74 = vector.multi_reduction <add>, %73, %cst_24 [1] : vector<8x8xf32> to vector<8xf32>
    %75 = vector.shape_cast %74 : vector<8xf32> to vector<8x1xf32>
    %76 = tpu.reciprocal %75 {approx = true} : vector<8x1xf32> -> vector<8x1xf32>
    %77 = vector.broadcast %76 : vector<8x1xf32> to vector<8x8xf32>
    %78 = arith.mulf %73, %77 : vector<8x8xf32>
    %79 = arith.truncf %78 : vector<8x8xf32> to vector<8x8xbf16>
    %cst_25 = arith.constant dense<0.000000e+00> : vector<8x32xf32>
    %80 = tpu.matmul %79, %65, %cst_25 {dimension_numbers = #tpu.dot_dimension_numbers<[1], [0], [0], [1], [0, 0, 1, 1], [], []>} : vector<8x8xbf16>, vector<8x32xbf16>, vector<8x32xf32> -> vector<8x32xf32>
    %81 = arith.truncf %80 : vector<8x32xf32> to vector<8x32xbf16>
    %c64 = arith.constant 64 : index
    %c0_26 = arith.constant 0 : index
    %82 = vector.load %arg4[%c64, %c0_26] : memref<128x128xbf16, #tpu.memory_space<vmem>>, vector<32x128xbf16>
    %cst_27 = arith.constant dense<0.000000e+00> : vector<8x128xf32>
    %83 = tpu.matmul %81, %82, %cst_27 {dimension_numbers = #tpu.dot_dimension_numbers<[1], [0], [0], [1], [0, 0, 1, 1], [], []>} : vector<8x32xbf16>, vector<32x128xbf16>, vector<8x128xf32> -> vector<8x128xf32>
    %84 = arith.addf %59, %83 : vector<8x128xf32>
    %85 = vector.extract_strided_slice %8 {offsets = [0, 96], sizes = [8, 32], strides = [1, 1]} : vector<8x128xf32> to vector<8x32xf32>
    %86 = arith.truncf %85 : vector<8x32xf32> to vector<8x32xbf16>
    %87 = vector.extract_strided_slice %9 {offsets = [0, 96], sizes = [8, 32], strides = [1, 1]} : vector<8x128xf32> to vector<8x32xf32>
    %88 = arith.truncf %87 : vector<8x32xf32> to vector<8x32xbf16>
    %89 = vector.extract_strided_slice %10 {offsets = [0, 96], sizes = [8, 32], strides = [1, 1]} : vector<8x128xf32> to vector<8x32xf32>
    %90 = arith.truncf %89 : vector<8x32xf32> to vector<8x32xbf16>
    %cst_28 = arith.constant dense<0.000000e+00> : vector<8x8xf32>
    %91 = tpu.matmul %86, %88, %cst_28 {dimension_numbers = #tpu.dot_dimension_numbers<[1], [1], [0], [0], [0, 0, 1, 0], [], []>} : vector<8x32xbf16>, vector<8x32xbf16>, vector<8x8xf32> -> vector<8x8xf32>
    %cst_29 = arith.constant 0.176776692 : f32
    %92 = vector.broadcast %cst_29 : f32 to vector<8x8xf32>
    %93 = arith.mulf %91, %92 : vector<8x8xf32>
    %cst_30 = arith.constant dense<0xFF800000> : vector<8xf32>
    %94 = vector.multi_reduction <maximumf>, %93, %cst_30 [1] : vector<8x8xf32> to vector<8xf32>
    %95 = vector.shape_cast %94 : vector<8xf32> to vector<8x1xf32>
    %96 = vector.broadcast %95 : vector<8x1xf32> to vector<8x8xf32>
    %97 = arith.subf %93, %96 : vector<8x8xf32>
    %98 = math.exp %97 : vector<8x8xf32>
    %cst_31 = arith.constant dense<0.000000e+00> : vector<8xf32>
    %99 = vector.multi_reduction <add>, %98, %cst_31 [1] : vector<8x8xf32> to vector<8xf32>
    %100 = vector.shape_cast %99 : vector<8xf32> to vector<8x1xf32>
    %101 = tpu.reciprocal %100 {approx = true} : vector<8x1xf32> -> vector<8x1xf32>
    %102 = vector.broadcast %101 : vector<8x1xf32> to vector<8x8xf32>
    %103 = arith.mulf %98, %102 : vector<8x8xf32>
    %104 = arith.truncf %103 : vector<8x8xf32> to vector<8x8xbf16>
    %cst_32 = arith.constant dense<0.000000e+00> : vector<8x32xf32>
    %105 = tpu.matmul %104, %90, %cst_32 {dimension_numbers = #tpu.dot_dimension_numbers<[1], [0], [0], [1], [0, 0, 1, 1], [], []>} : vector<8x8xbf16>, vector<8x32xbf16>, vector<8x32xf32> -> vector<8x32xf32>
    %106 = arith.truncf %105 : vector<8x32xf32> to vector<8x32xbf16>
    %c96 = arith.constant 96 : index
    %c0_33 = arith.constant 0 : index
    %107 = vector.load %arg4[%c96, %c0_33] : memref<128x128xbf16, #tpu.memory_space<vmem>>, vector<32x128xbf16>
    %cst_34 = arith.constant dense<0.000000e+00> : vector<8x128xf32>
    %108 = tpu.matmul %106, %107, %cst_34 {dimension_numbers = #tpu.dot_dimension_numbers<[1], [0], [0], [1], [0, 0, 1, 1], [], []>} : vector<8x32xbf16>, vector<32x128xbf16>, vector<8x128xf32> -> vector<8x128xf32>
    %109 = arith.addf %84, %108 : vector<8x128xf32>
    %c0_35 = arith.constant 0 : index
    %c0_36 = arith.constant 0 : index
    %110 = vector.load %arg5[%c0_35, %c0_36] : memref<1x128xf32, #tpu.memory_space<vmem>>, vector<1x128xf32>
    %111 = vector.broadcast %110 : vector<1x128xf32> to vector<8x128xf32>
    %112 = arith.addf %109, %111 : vector<8x128xf32>
    %113 = arith.addf %1, %112 : vector<8x128xf32>
    %c0_37 = arith.constant 0 : index
    %c0_38 = arith.constant 0 : index
    %114 = vector.load %arg6[%c0_37, %c0_38] : memref<1x128xf32, #tpu.memory_space<vmem>>, vector<1x128xf32>
    %c0_39 = arith.constant 0 : index
    %c0_40 = arith.constant 0 : index
    %115 = vector.load %arg7[%c0_39, %c0_40] : memref<1x128xf32, #tpu.memory_space<vmem>>, vector<1x128xf32>
    %cst_41 = arith.constant dense<0.000000e+00> : vector<8xf32>
    %116 = vector.multi_reduction <add>, %113, %cst_41 [1] : vector<8x128xf32> to vector<8xf32>
    %117 = vector.shape_cast %116 : vector<8xf32> to vector<8x1xf32>
    %cst_42 = arith.constant 1.280000e+02 : f32
    %118 = vector.broadcast %cst_42 : f32 to vector<8x1xf32>
    %119 = arith.divf %117, %118 : vector<8x1xf32>
    %120 = vector.broadcast %119 : vector<8x1xf32> to vector<8x128xf32>
    %121 = arith.subf %113, %120 : vector<8x128xf32>
    %122 = arith.mulf %121, %121 : vector<8x128xf32>
    %cst_43 = arith.constant dense<0.000000e+00> : vector<8xf32>
    %123 = vector.multi_reduction <add>, %122, %cst_43 [1] : vector<8x128xf32> to vector<8xf32>
    %124 = vector.shape_cast %123 : vector<8xf32> to vector<8x1xf32>
    %cst_44 = arith.constant 1.280000e+02 : f32
    %125 = vector.broadcast %cst_44 : f32 to vector<8x1xf32>
    %126 = arith.divf %124, %125 : vector<8x1xf32>
    %127 = vector.broadcast %119 : vector<8x1xf32> to vector<8x128xf32>
    %128 = arith.subf %113, %127 : vector<8x128xf32>
    %cst_45 = arith.constant 9.99999974E-6 : f32
    %129 = vector.broadcast %cst_45 : f32 to vector<8x1xf32>
    %130 = arith.addf %126, %129 : vector<8x1xf32>
    %131 = math.rsqrt %130 : vector<8x1xf32>
    %132 = vector.broadcast %131 : vector<8x1xf32> to vector<8x128xf32>
    %133 = arith.mulf %128, %132 : vector<8x128xf32>
    %134 = vector.broadcast %114 : vector<1x128xf32> to vector<8x128xf32>
    %135 = arith.mulf %133, %134 : vector<8x128xf32>
    %136 = vector.broadcast %115 : vector<1x128xf32> to vector<8x128xf32>
    %137 = arith.addf %135, %136 : vector<8x128xf32>
    %138 = arith.truncf %137 : vector<8x128xf32> to vector<8x128xbf16>
    %c0_46 = arith.constant 0 : index
    %c0_47 = arith.constant 0 : index
    %139 = vector.load %arg8[%c0_46, %c0_47] : memref<128x256xbf16, #tpu.memory_space<vmem>>, vector<128x256xbf16>
    %cst_48 = arith.constant dense<0.000000e+00> : vector<8x256xf32>
    %140 = tpu.matmul %138, %139, %cst_48 {dimension_numbers = #tpu.dot_dimension_numbers<[1], [0], [0], [1], [0, 0, 1, 1], [], []>} : vector<8x128xbf16>, vector<128x256xbf16>, vector<8x256xf32> -> vector<8x256xf32>
    %c0_49 = arith.constant 0 : index
    %c0_50 = arith.constant 0 : index
    %141 = vector.load %arg9[%c0_49, %c0_50] : memref<1x256xf32, #tpu.memory_space<vmem>>, vector<1x256xf32>
    %142 = vector.broadcast %141 : vector<1x256xf32> to vector<8x256xf32>
    %143 = arith.addf %140, %142 : vector<8x256xf32>
    %cst_51 = arith.constant 0.000000e+00 : f32
    %144 = vector.broadcast %cst_51 : f32 to vector<8x256xf32>
    %145 = arith.maximumf %143, %144 : vector<8x256xf32>
    %146 = arith.truncf %145 : vector<8x256xf32> to vector<8x256xbf16>
    %c0_52 = arith.constant 0 : index
    %c0_53 = arith.constant 0 : index
    %147 = vector.load %arg10[%c0_52, %c0_53] : memref<256x128xbf16, #tpu.memory_space<vmem>>, vector<256x128xbf16>
    %cst_54 = arith.constant dense<0.000000e+00> : vector<8x128xf32>
    %148 = tpu.matmul %146, %147, %cst_54 {dimension_numbers = #tpu.dot_dimension_numbers<[1], [0], [0], [1], [0, 0, 1, 1], [], []>} : vector<8x256xbf16>, vector<256x128xbf16>, vector<8x128xf32> -> vector<8x128xf32>
    %c0_55 = arith.constant 0 : index
    %c0_56 = arith.constant 0 : index
    %149 = vector.load %arg11[%c0_55, %c0_56] : memref<1x128xf32, #tpu.memory_space<vmem>>, vector<1x128xf32>
    %150 = vector.broadcast %149 : vector<1x128xf32> to vector<8x128xf32>
    %151 = arith.addf %148, %150 : vector<8x128xf32>
    %152 = arith.addf %137, %151 : vector<8x128xf32>
    %c0_57 = arith.constant 0 : index
    %c0_58 = arith.constant 0 : index
    %153 = vector.load %arg12[%c0_57, %c0_58] : memref<1x128xf32, #tpu.memory_space<vmem>>, vector<1x128xf32>
    %c0_59 = arith.constant 0 : index
    %c0_60 = arith.constant 0 : index
    %154 = vector.load %arg13[%c0_59, %c0_60] : memref<1x128xf32, #tpu.memory_space<vmem>>, vector<1x128xf32>
    %cst_61 = arith.constant dense<0.000000e+00> : vector<8xf32>
    %155 = vector.multi_reduction <add>, %152, %cst_61 [1] : vector<8x128xf32> to vector<8xf32>
    %156 = vector.shape_cast %155 : vector<8xf32> to vector<8x1xf32>
    %cst_62 = arith.constant 1.280000e+02 : f32
    %157 = vector.broadcast %cst_62 : f32 to vector<8x1xf32>
    %158 = arith.divf %156, %157 : vector<8x1xf32>
    %159 = vector.broadcast %158 : vector<8x1xf32> to vector<8x128xf32>
    %160 = arith.subf %152, %159 : vector<8x128xf32>
    %161 = arith.mulf %160, %160 : vector<8x128xf32>
    %cst_63 = arith.constant dense<0.000000e+00> : vector<8xf32>
    %162 = vector.multi_reduction <add>, %161, %cst_63 [1] : vector<8x128xf32> to vector<8xf32>
    %163 = vector.shape_cast %162 : vector<8xf32> to vector<8x1xf32>
    %cst_64 = arith.constant 1.280000e+02 : f32
    %164 = vector.broadcast %cst_64 : f32 to vector<8x1xf32>
    %165 = arith.divf %163, %164 : vector<8x1xf32>
    %166 = vector.broadcast %158 : vector<8x1xf32> to vector<8x128xf32>
    %167 = arith.subf %152, %166 : vector<8x128xf32>
    %cst_65 = arith.constant 9.99999974E-6 : f32
    %168 = vector.broadcast %cst_65 : f32 to vector<8x1xf32>
    %169 = arith.addf %165, %168 : vector<8x1xf32>
    %170 = math.rsqrt %169 : vector<8x1xf32>
    %171 = vector.broadcast %170 : vector<8x1xf32> to vector<8x128xf32>
    %172 = arith.mulf %167, %171 : vector<8x128xf32>
    %173 = vector.broadcast %153 : vector<1x128xf32> to vector<8x128xf32>
    %174 = arith.mulf %172, %173 : vector<8x128xf32>
    %175 = vector.broadcast %154 : vector<1x128xf32> to vector<8x128xf32>
    %176 = arith.addf %174, %175 : vector<8x128xf32>
    %c0_66 = arith.constant 0 : index
    %c0_67 = arith.constant 0 : index
    %177 = vector.load %arg14[%c0_66, %c0_67] : memref<1x128xf32, #tpu.memory_space<vmem>>, vector<1x128xf32>
    %c0_68 = arith.constant 0 : index
    %c0_69 = arith.constant 0 : index
    %178 = vector.load %arg15[%c0_68, %c0_69] : memref<1x128xf32, #tpu.memory_space<vmem>>, vector<1x128xf32>
    %cst_70 = arith.constant dense<0.000000e+00> : vector<8xf32>
    %179 = vector.multi_reduction <add>, %176, %cst_70 [1] : vector<8x128xf32> to vector<8xf32>
    %180 = vector.shape_cast %179 : vector<8xf32> to vector<8x1xf32>
    %cst_71 = arith.constant 1.280000e+02 : f32
    %181 = vector.broadcast %cst_71 : f32 to vector<8x1xf32>
    %182 = arith.divf %180, %181 : vector<8x1xf32>
    %183 = vector.broadcast %182 : vector<8x1xf32> to vector<8x128xf32>
    %184 = arith.subf %176, %183 : vector<8x128xf32>
    %185 = arith.mulf %184, %184 : vector<8x128xf32>
    %cst_72 = arith.constant dense<0.000000e+00> : vector<8xf32>
    %186 = vector.multi_reduction <add>, %185, %cst_72 [1] : vector<8x128xf32> to vector<8xf32>
    %187 = vector.shape_cast %186 : vector<8xf32> to vector<8x1xf32>
    %cst_73 = arith.constant 1.280000e+02 : f32
    %188 = vector.broadcast %cst_73 : f32 to vector<8x1xf32>
    %189 = arith.divf %187, %188 : vector<8x1xf32>
    %190 = vector.broadcast %182 : vector<8x1xf32> to vector<8x128xf32>
    %191 = arith.subf %176, %190 : vector<8x128xf32>
    %cst_74 = arith.constant 9.99999974E-6 : f32
    %192 = vector.broadcast %cst_74 : f32 to vector<8x1xf32>
    %193 = arith.addf %189, %192 : vector<8x1xf32>
    %194 = math.rsqrt %193 : vector<8x1xf32>
    %195 = vector.broadcast %194 : vector<8x1xf32> to vector<8x128xf32>
    %196 = arith.mulf %191, %195 : vector<8x128xf32>
    %197 = vector.broadcast %177 : vector<1x128xf32> to vector<8x128xf32>
    %198 = arith.mulf %196, %197 : vector<8x128xf32>
    %199 = vector.broadcast %178 : vector<1x128xf32> to vector<8x128xf32>
    %200 = arith.addf %198, %199 : vector<8x128xf32>
    %c0_75 = arith.constant 0 : index
    %c0_76 = arith.constant 0 : index
    %c0_77 = arith.constant 0 : index
    %201 = vector.load %arg16[%c0_75, %c0_76, %c0_77] : memref<1x8x128xf32, #tpu.memory_space<vmem>>, vector<1x8x128xf32>
    %202 = vector.shape_cast %201 : vector<1x8x128xf32> to vector<8x128xf32>
    %203 = vector.shape_cast %200 : vector<8x128xf32> to vector<1x8x128xf32>
    tpu.vector_store %arg16[%c0_75, %c0_76, %c0_77], %203 {strides = array<i32>} : memref<1x8x128xf32, #tpu.memory_space<vmem>>, vector<1x8x128xf32>,
    return
  }
  func.func @transform_0(%arg0: i32) -> (i32, i32, i32) {
    %c0_i32 = arith.constant 0 : i32
    %c0_i32_0 = arith.constant 0 : i32
    %c0_i32_1 = arith.constant 0 : i32
    return %arg0, %c0_i32, %c0_i32_0 : i32, i32, i32
  }
  func.func @transform_1(%arg0: i32) -> (i32, i32) {
    %c0_i32 = arith.constant 0 : i32
    %c0_i32_0 = arith.constant 0 : i32
    %c0_i32_1 = arith.constant 0 : i32
    return %c0_i32, %c0_i32_0 : i32, i32
  }
  func.func @transform_2(%arg0: i32) -> (i32, i32) {
    %c0_i32 = arith.constant 0 : i32
    %c0_i32_0 = arith.constant 0 : i32
    %c0_i32_1 = arith.constant 0 : i32
    return %c0_i32, %c0_i32_0 : i32, i32
  }
  func.func @transform_3(%arg0: i32) -> (i32, i32) {
    %c0_i32 = arith.constant 0 : i32
    %c0_i32_0 = arith.constant 0 : i32
    %c0_i32_1 = arith.constant 0 : i32
    return %c0_i32, %c0_i32_0 : i32, i32
  }
  func.func @transform_4(%arg0: i32) -> (i32, i32) {
    %c0_i32 = arith.constant 0 : i32
    %c0_i32_0 = arith.constant 0 : i32
    %c0_i32_1 = arith.constant 0 : i32
    return %c0_i32, %c0_i32_0 : i32, i32
  }
  func.func @transform_5(%arg0: i32) -> (i32, i32) {
    %c0_i32 = arith.constant 0 : i32
    %c0_i32_0 = arith.constant 0 : i32
    %c0_i32_1 = arith.constant 0 : i32
    return %c0_i32, %c0_i32_0 : i32, i32
  }
  func.func @transform_6(%arg0: i32) -> (i32, i32) {
    %c0_i32 = arith.constant 0 : i32
    %c0_i32_0 = arith.constant 0 : i32
    %c0_i32_1 = arith.constant 0 : i32
    return %c0_i32, %c0_i32_0 : i32, i32
  }
  func.func @transform_7(%arg0: i32) -> (i32, i32) {
    %c0_i32 = arith.constant 0 : i32
    %c0_i32_0 = arith.constant 0 : i32
    %c0_i32_1 = arith.constant 0 : i32
    return %c0_i32, %c0_i32_0 : i32, i32
  }
  func.func @transform_8(%arg0: i32) -> (i32, i32) {
    %c0_i32 = arith.constant 0 : i32
    %c0_i32_0 = arith.constant 0 : i32
    %c0_i32_1 = arith.constant 0 : i32
    return %c0_i32, %c0_i32_0 : i32, i32
  }
  func.func @transform_9(%arg0: i32) -> (i32, i32) {
    %c0_i32 = arith.constant 0 : i32
    %c0_i32_0 = arith.constant 0 : i32
    %c0_i32_1 = arith.constant 0 : i32
    return %c0_i32, %c0_i32_0 : i32, i32
  }
  func.func @transform_10(%arg0: i32) -> (i32, i32) {
    %c0_i32 = arith.constant 0 : i32
    %c0_i32_0 = arith.constant 0 : i32
    %c0_i32_1 = arith.constant 0 : i32
    return %c0_i32, %c0_i32_0 : i32, i32
  }
  func.func @transform_11(%arg0: i32) -> (i32, i32) {
    %c0_i32 = arith.constant 0 : i32
    %c0_i32_0 = arith.constant 0 : i32
    %c0_i32_1 = arith.constant 0 : i32
    return %c0_i32, %c0_i32_0 : i32, i32
  }
  func.func @transform_12(%arg0: i32) -> (i32, i32) {
    %c0_i32 = arith.constant 0 : i32
    %c0_i32_0 = arith.constant 0 : i32
    %c0_i32_1 = arith.constant 0 : i32
    return %c0_i32, %c0_i32_0 : i32, i32
  }
  func.func @transform_13(%arg0: i32) -> (i32, i32) {
    %c0_i32 = arith.constant 0 : i32
    %c0_i32_0 = arith.constant 0 : i32
    %c0_i32_1 = arith.constant 0 : i32
    return %c0_i32, %c0_i32_0 : i32, i32
  }
  func.func @transform_14(%arg0: i32) -> (i32, i32) {
    %c0_i32 = arith.constant 0 : i32
    %c0_i32_0 = arith.constant 0 : i32
    %c0_i32_1 = arith.constant 0 : i32
    return %c0_i32, %c0_i32_0 : i32, i32
  }
  func.func @transform_15(%arg0: i32) -> (i32, i32, i32) {
    %c0_i32 = arith.constant 0 : i32
    %c0_i32_0 = arith.constant 0 : i32
    %c0_i32_1 = arith.constant 0 : i32
    return %arg0, %c0_i32, %c0_i32_0 : i32, i32, i32
  }
}

</mosaic_0001>

<bundles_post_ra>
// kernel: transformer_question_encoder.3
= control target key start
LH: loop header
LB: loop body
LE: loop exit
PB: predicated region body
PF: predicated region fallthrough
CT: control target
= control target key end

     0   :  { %9 = vsyncpa [#allocation3], 0  ;;  %s494_s15 = smov 0   ;;  %s556_s0 = inlined_call_operand.vmem [shape: f32[2,8,64], index: 0, kind: input, shape index: {}]   ;;  %s557_s1 = inlined_call_operand.hbm [shape: bf16[64,128], index: 1, kind: input, shape index: {}]   ;;  %s558_s2 = inlined_call_operand.vmem [shape: f32[1,128], index: 2, kind: input, shape index: {}]   ;;  %s559_s3 = inlined_call_operand.vmem [shape: f32[8,128], index: 3, kind: input, shape index: {}]   ;;  %s560_s4 = inlined_call_operand.vmem [shape: f32[2,8,128], index: 4, kind: output, shape index: {}]  }
   0x1 LB: > { %s500_s16 = sadd.s32 4294967295, %s462_s15   ;;  %p365_p0 = scmp.ge.s32.totalorder %s462_s15, 1  ;;  %s462_s15 = sphi %s494_s15, %s15_s15  }
   0x2   : > { %p135_p1 = scmp.lt.s32.totalorder %s462_s15, 3  ;;  %s464_s17 = smov [#allocation2]  }
   0x3   : > { %s147_s18 = sshll.u32 %s464_s17, 4  ;;  %p561_p3 = scmp.eq.s32.totalorder %s500_s16, 0  ;;  %s148_s18 = int_to_ptr.vmem [resolvable:$true] %s147_s18 }
   0x4   : > { %p504_p2 = pnand %p365_p0, %p135_p1  ;;  %s424_s23 = scalar_lea.hbm %s557_s1, 512 }
   0x5   : > { %p425_p6 = scmp.ne.s32.totalorder %s557_s1, %s424_s23  ;;  %p431_p10 = scmp.lt.u32.totalorder %s424_s23, %s557_s1 }
   0x6   : > { %s563_s19 = scalar_select %p504_p2, 1, 0 }
   0x7   : > { %p401_p4 = pneg %p504_p2 }
   0x9   : > { %p513_p5 = pnand %p561_p3, %p401_p4 }
   0xb   : > { %p426_p7 = pneg %p513_p5 }
   0xd   : > { %p427_p8 = pnand %p426_p7, %p425_p6 }
   0xf   : > { %p428_p9 = pneg %p427_p8 }
  0x11   : > { %p433_p11 = pnand %p431_p10, %p428_p9 }
  0x13   : > { %436 = shalt.err (!%p433_p11)
}
  0x14   : > { %s437_s28 = scalar_lea.vmem %s148_s18, 512  ;;  %p445_p1 = scmp.lt.s32.totalorder %s148_s18, %s148_s18 }
  0x15   : > { %p438_p12 = scmp.ne.s32.totalorder %s148_s18, %s437_s28  ;;  %p446_p4 = scmp.lt.s32.totalorder %s437_s28, %s437_s28 }
  0x17   : > { %p440_p13 = pnand %p438_p12, %p426_p7  ;;  %p447_p3 = por %p446_p4, %p445_p1 }
  0x19   : > { %p441_p0 = pneg %p440_p13 }
  0x1b   : > { %p448_p2 = pnand %p447_p3, %p441_p0 }
  0x1d   : > { %451 = shalt.err (!%p448_p2)
}
  0x1e   : > { %s465_s29 = smov 64   ;;  %s466_s30 = smov 4  }
  0x1f   : > { %404 = dma.hbm_to_vmem [thread:$0]  (!%p513_p5), %s557_s1, 512, %s148_s18, [#allocation3], %s465_s29, %s465_s29, %s466_s30  }
  0x20   : > { %p565_p6 = scmp.ne.s32.totalorder %s563_s19, 0 }
  0x21   : > { %p566_p8 = scmp.eq.s32.totalorder (!%p565_p6), %s500_s16, 0 }
  0x22   : > { %176 = sbr.rel (%p565_p6) target bundleno = 278 (0x116), region = 36 }
  0x29   : > { %457 = dma.done.wait (%p566_p8), [#allocation3], 512   ;;  %p567_p7 = pmov %p566_p8 }
  0x2a   : > { %v467_v0 = vmov 0.0   ;;  %vm468_vm0 = vmmov 0   ;;  %p200_p2 = scmp.lt.s32.totalorder %s500_s16, 1  ;;  %v420_v1 = vld [vmem:[#allocation2] sm:$0xff]   ;;  %v421_v2 = vld [vmem:[#allocation2 + $0x8] sm:$0xff]   ;;  %v422_v3 = vld [vmem:[#allocation2 + $0x10] sm:$0xff]  }
  0x2b   : > { %459 = vsyncadd (%p567_p7), [#allocation3], 4294966784  ;;  %385 = vmatprep.subr.bf16.mxu0 %v467_v0  ;;  %393 = vmatprep.mubr.msk.bf16.mxu0 %vm468_vm0, %v467_v0  ;;  %v423_v4 = vld [vmem:[#allocation2 + $0x18] sm:$0xff]   ;;  %vm250_vm1 = vcmask 523264   ;;  %v372_v7 = vld [vmem:[%s558_s2] ss:$0 sm:$0xff] }
  0x2c   : > { %s569_s16 = smov (!%p200_p2, %s500_s16), 1  ;;  %386 = vmatpush3.bf16.msra.mxu0 %v420_v1  ;;  %v295_v11 = vld [vmem:[%s559_s3] sm:$0xff] }
  0x2d   : > { %387 = vmatprep.subr.bf16.mxu0 %v467_v0  ;;  %s370_s7 = sshll.u32 %s569_s16, 3 }
  0x2e   : > { %s203_s10 = scalar_lea.vmem %s556_s0, %s370_s7  ;;  %s207_s18 = scalar_lea.vmem %s560_s4, %s370_s7 }
  0x2f   : > { %v209_v5 = vld [vmem:[%s203_s10] sm:$0xff] }
  0x30   : > { %388 = vmatpush3.bf16.msra.mxu0 %v421_v2  ;;  %v210_v6 = vpack.c.bf16 %v209_v5, %v209_v5 }
  0x31   : > { %389 = vmatprep.subr.bf16.mxu0 %v467_v0 }
  0x34   : > { %390 = vmatpush3.bf16.msra.mxu0 %v422_v3 }
  0x35   : > { %391 = vmatprep.subr.bf16.mxu0 %v467_v0 }
  0x38   : > { %392 = vmatpush3.bf16.msra.mxu0 %v423_v4 }
  0x3b   : > { %394 = vmatmul.mubr.msk.bf16.vlgmr.msra.gmra.mrb[0].mxu0 %vm250_vm1, %v210_v6 }
 0x10e   : > { %v288_v8 = vpop.f32.mrb[0].mxu0 }
 0x10f   : > { %v289_v9 = vadd.f32 %v372_v7, %v288_v8  ;;  %v395_v10 = vpop.f32.mrb[1].mxu0 }
 0x110   : > { %v291_v12 = vpop.f32.mrb[2].mxu0 }
 0x111   : > { %v294_v13 = vmul.f32 11.313708, %v289_v9  ;;  %v396_v14 = vpop.f32.mrb[3].mxu0 }
 0x113   : > { %v296_v15 = vadd.f32 %v295_v11, %v294_v13 }
 0x115   : > { %297 = vst [vmem:[%s207_s18] sm:$0xff] %v296_v15 }
 0x116 PF: > { %s15_s15 = sadd.s32 1, %s462_s15  }
 0x117   : > { %p12_p3 = scmp.ge.s32.totalorder %s15_s15, 4  }
 0x119   :  { %14 = sbr.rel (!%p12_p3) target bundleno = 1 (0x1), region = 71 }
 0x120   :  { %317 = vsyncpa [#allocation3], 1 }
 0x121   :  { %319 = vsyncpa [#allocation3 + $0x1], 1 }

// kernel: transformer_question_encoder.4
= control target key start
LH: loop header
LB: loop body
LE: loop exit
PB: predicated region body
PF: predicated region fallthrough
CT: control target
= control target key end

     0   :  { %18 = vsyncpa [#allocation3], 0  ;;  %s2359_s25 = smov 0   ;;  %s2748_s0 = inlined_call_operand.vmem [shape: f32[2,8,128], index: 0, kind: input, shape index: {}]   ;;  %s2749_s1 = inlined_call_operand.vmem [shape: bf16[128,384], index: 1, kind: input, shape index: {}]   ;;  %s2750_s2 = inlined_call_operand.vmem [shape: f32[1,384], index: 2, kind: input, shape index: {}]   ;;  %s2751_s3 = inlined_call_operand.hbm [shape: bf16[128,128], index: 3, kind: input, shape index: {}]   ;;  %s2752_s4 = inlined_call_operand.vmem [shape: f32[1,128], index: 4, kind: input, shape index: {}]   ;;  %s2753_s5 = inlined_call_operand.vmem [shape: f32[1,128], index: 5, kind: input, shape index: {}]   ;;  %s2754_s6 = inlined_call_operand.vmem [shape: f32[1,128], index: 6, kind: input, shape index: {}]   ;;  %s2755_s7 = inlined_call_operand.vmem [shape: bf16[128,256], index: 7, kind: input, shape index: {}]   ;;  %s2756_s8 = inlined_call_operand.vmem [shape: f32[1,256], index: 8, kind: input, shape index: {}]   ;;  %s2757_s9 = inlined_call_operand.vmem [shape: bf16[256,128], index: 9, kind: input, shape index: {}]   ;;  %s2758_s10 = inlined_call_operand.vmem [shape: f32[1,128], index: 10, kind: input, shape index: {}]   ;;  %s2759_s11 = inlined_call_operand.vmem [shape: f32[1,128], index: 11, kind: input, shape index: {}]   ;;  %s2760_s12 = inlined_call_operand.vmem [shape: f32[1,128], index: 12, kind: input, shape index: {}]   ;;  %s2761_s13 = inlined_call_operand.vmem [shape: f32[2,8,128], index: 13, kind: output, shape index: {}]  }
   0x1 LB: > { %s2365_s26 = sadd.s32 4294967295, %s2278_s25   ;;  %p1863_p0 = scmp.ge.s32.totalorder %s2278_s25, 1  ;;  %s2278_s25 = sphi %s2359_s25, %s24_s25  }
   0x2   : > { %p333_p1 = scmp.lt.s32.totalorder %s2278_s25, 3  ;;  %s2280_s27 = smov [#allocation2]  }
   0x3   : > { %s351_s28 = sshll.u32 %s2280_s27, 4  ;;  %p2762_p3 = scmp.eq.s32.totalorder %s2365_s26, 0  ;;  %s352_s28 = int_to_ptr.vmem [resolvable:$true] %s351_s28 }
   0x4   : > { %p2369_p2 = pnand %p1863_p0, %p333_p1  ;;  %s2240_s16 = scalar_lea.hbm %s2751_s3, 1024 }
   0x5   : > { %p2241_p6 = scmp.ne.s32.totalorder %s2751_s3, %s2240_s16  ;;  %p2247_p10 = scmp.lt.u32.totalorder %s2240_s16, %s2751_s3 }
   0x6   : > { %s2764_s29 = scalar_select %p2369_p2, 1, 0 }
   0x7   : > { %p2117_p4 = pneg %p2369_p2 }
   0x9   : > { %p2378_p5 = pnand %p2762_p3, %p2117_p4 }
   0xb   : > { %p2242_p7 = pneg %p2378_p5 }
   0xd   : > { %p2243_p8 = pnand %p2242_p7, %p2241_p6 }
   0xf   : > { %p2244_p9 = pneg %p2243_p8 }
  0x11   : > { %p2249_p11 = pnand %p2247_p10, %p2244_p9 }
  0x13   : > { %2252 = shalt.err (!%p2249_p11)
}
  0x14   : > { %s2253_s21 = scalar_lea.vmem %s352_s28, 1024  ;;  %p2261_p1 = scmp.lt.s32.totalorder %s352_s28, %s352_s28 }
  0x15   : > { %p2254_p12 = scmp.ne.s32.totalorder %s352_s28, %s2253_s21  ;;  %p2262_p4 = scmp.lt.s32.totalorder %s2253_s21, %s2253_s21 }
  0x17   : > { %p2256_p13 = pnand %p2254_p12, %p2242_p7  ;;  %p2263_p3 = por %p2262_p4, %p2261_p1 }
  0x19   : > { %p2257_p0 = pneg %p2256_p13 }
  0x1b   : > { %p2264_p2 = pnand %p2263_p3, %p2257_p0 }
  0x1d   : > { %2267 = shalt.err (!%p2264_p2)
}
  0x1e   : > { %s2281_s22 = smov 64   ;;  %s2282_s23 = smov 4  }
  0x1f   : > { %2120 = dma.hbm_to_vmem [thread:$0]  (!%p2378_p5), %s2751_s3, 1024, %s352_s28, [#allocation3], %s2281_s22, %s2281_s22, %s2282_s23  }
  0x20   : > { %p2766_p6 = scmp.ne.s32.totalorder %s2764_s29, 0 }
  0x21   : > { %p2767_p8 = scmp.eq.s32.totalorder (!%p2766_p6), %s2365_s26, 0 }
  0x22   : > { %401 = sbr.rel (%p2766_p6) target bundleno = 3731 (0xe93), region = 72 }
  0x29   : > { %2273 = dma.done.wait (%p2767_p8), [#allocation3], 1024   ;;  %p2768_p7 = pmov %p2767_p8 }
  0x2a   : > { %v2283_v0 = vmov 0   ;;  %v2140_v1 = vld [vmem:[%s2749_s1 + $0x4] ss:$12 sps:$4 sm:$0xff]   ;;  %v2142_v2 = vld [vmem:[%s2749_s1] ss:$12 sps:$4 sm:$0xff]   ;;  %p443_p2 = scmp.lt.s32.totalorder %s2365_s26, 1  ;;  %v488_v20 = vlaneseq }
  0x2b   : > { %2275 = vsyncadd (%p2768_p7), [#allocation3], 4294966272  ;;  %663 = vmatprep.mubr.bf16.mxu0 %v2283_v0  ;;  %631 = vmatprep.subr.bf16.mxu0 %v2140_v1  ;;  %v2143_v3 = vld [vmem:[%s2749_s1 + $0x1c] ss:$12 sps:$4 sm:$0xff]   ;;  %v2145_v4 = vld [vmem:[%s2749_s1 + $0x18] ss:$12 sps:$4 sm:$0xff]  }
  0x2c   : > { %632 = vmatpush1.bf16.msra.mxu0 %v2142_v2  ;;  %v2146_v5 = vld [vmem:[%s2749_s1 + $0x34] ss:$12 sps:$4 sm:$0xff]   ;;  %s2770_s26 = smov (!%p443_p2, %s2365_s26), 1  ;;  %v2148_v6 = vld [vmem:[%s2749_s1 + $0x30] ss:$12 sps:$4 sm:$0xff]   ;;  %v2284_v19 = vmov 0.0  }
  0x2d   : > { %633 = vmatprep.subr.bf16.mxu0 %v2143_v3  ;;  %v2149_v7 = vld [vmem:[%s2749_s1 + $0x4c] ss:$12 sps:$4 sm:$0xff]   ;;  %v2151_v8 = vld [vmem:[%s2749_s1 + $0x48] ss:$12 sps:$4 sm:$0xff]   ;;  %s1868_s30 = sshll.u32 %s2770_s26, 3  ;;  %2013 = vmatprep.subr.bf16.mxu1 %v2284_v19  ;;  %vm2285_vm0 = vmmov 0  }
  0x2e   : > { %v2152_v9 = vld [vmem:[%s2749_s1 + $0x64] ss:$12 sps:$4 sm:$0xff]   ;;  %v2154_v10 = vld [vmem:[%s2749_s1 + $0x60] ss:$12 sps:$4 sm:$0xff]   ;;  %v2155_v11 = vld [vmem:[%s2749_s1 + $0x7c] ss:$12 sps:$4 sm:$0xff]   ;;  %s446_s29 = scalar_lea.vmem %s2748_s0, %s1868_s30  ;;  %2029 = vmatprep.mubr.msk.bf16.mxu1 %vm2285_vm0, %v2284_v19  ;;  %s450_s22 = scalar_lea.vmem %s2761_s13, %s1868_s30 }
  0x2f   : > { %v2157_v12 = vld [vmem:[%s2749_s1 + $0x78] ss:$12 sps:$4 sm:$0xff]   ;;  %v2158_v13 = vld [vmem:[%s2749_s1 + $0x94] ss:$12 sps:$4 sm:$0xff]   ;;  %v2160_v14 = vld [vmem:[%s2749_s1 + $0x90] ss:$12 sps:$4 sm:$0xff]  }
  0x30   : > { %634 = vmatpush1.bf16.msra.mxu0 %v2145_v4  ;;  %v2161_v15 = vld [vmem:[%s2749_s1 + $0xac] ss:$12 sps:$4 sm:$0xff]   ;;  %v2163_v16 = vld [vmem:[%s2749_s1 + $0xa8] ss:$12 sps:$4 sm:$0xff]   ;;  %v2463_v17 = vld [vmem:[%s446_s29] sm:$0xff]  ;;  %v2476_v21 = vshrl.u32 %v488_v20, 7 }
  0x31   : > { %635 = vmatprep.subr.bf16.mxu0 %v2146_v5  ;;  %v2467_v18 = vpack.c.bf16 %v2463_v17, %v2463_v17  ;;  %v2482_v23 = vld [vmem:[%s2750_s2] sm:$0x7]  ;;  %vm715_vm1 = vcmask 261120   ;;  %s2286_s20 = smov 96   ;;  %v2164_v36 = vld [vmem:[%s2749_s1 + $0x8] ss:$12 sps:$4 sm:$0xff]  }
  0x32   : > { %v494_v22 = vsub.s32 1, %v2476_v21  ;;  %v490_v24 = vsub.s32 0, %v2476_v21  ;;  %2014 = vmatpush3.bf16.msra.mxu1 %v2164_v36  ;;  %v2165_v37 = vld [vmem:[%s2749_s1 + $0x20] ss:$12 sps:$4 sm:$0xff]   ;;  %v2166_v38 = vld [vmem:[%s2749_s1 + $0x38] ss:$12 sps:$4 sm:$0xff]  }
  0x33   : > { %2015 = vmatprep.subr.bf16.mxu1 %v2284_v19  ;;  %v2167_v39 = vld [vmem:[%s2749_s1 + $0x50] ss:$12 sps:$4 sm:$0xff]   ;;  %v2168_v40 = vld [vmem:[%s2749_s1 + $0x68] ss:$12 sps:$4 sm:$0xff]   ;;  %v2169_v41 = vld [vmem:[%s2749_s1 + $0x80] ss:$12 sps:$4 sm:$0xff]  }
  0x34   : > { %636 = vmatpush1.bf16.msra.mxu0 %v2148_v6  ;;  %v495_v25 = vrot.slane %v2482_v23, %v494_v22  ;;  %v491_v26 = vrot.slane %v2482_v23, %v490_v24  ;;  %v2170_v44 = vld [vmem:[%s2749_s1 + $0x98] ss:$12 sps:$4 sm:$0xff]   ;;  %v2171_v45 = vld [vmem:[%s2749_s1 + $0xb0] ss:$12 sps:$4 sm:$0xff]   ;;  %vm763_vm2 = vcmask 64512   ;;  %v498_v5 = vsub.s32 2, %v2476_v21 }
  0x35   : > { %637 = vmatprep.subr.bf16.mxu0 %v2149_v7  ;;  %s2287_s24 = smov 64   ;;  %vm779_vm3 = vcmask 1043456  }
  0x36   : > { %2016 = vmatpush3.bf16.msra.mxu1 %v2165_v37  ;;  %v499_v6 = vrot.slane %v2482_v23, %v498_v5  ;;  %v2174_v23 = vld [vmem:[#allocation2 + $0x10] sm:$0xff]  }
  0x37   : > { %2017 = vmatprep.subr.bf16.mxu1 %v2284_v19 }
  0x38   : > { %638 = vmatpush1.bf16.msra.mxu0 %v2151_v8 }
  0x39   : > { %639 = vmatprep.subr.bf16.mxu0 %v2152_v9 }
  0x3a   : > { %2018 = vmatpush3.bf16.msra.mxu1 %v2166_v38 }
  0x3b   : > { %2019 = vmatprep.subr.bf16.mxu1 %v2284_v19 }
  0x3c   : > { %640 = vmatpush1.bf16.msra.mxu0 %v2154_v10 }
  0x3d   : > { %641 = vmatprep.subr.bf16.mxu0 %v2155_v11 }
  0x3e   : > { %2020 = vmatpush3.bf16.msra.mxu1 %v2167_v39 }
  0x3f   : > { %2021 = vmatprep.subr.bf16.mxu1 %v2284_v19 }
  0x40   : > { %642 = vmatpush1.bf16.msra.mxu0 %v2157_v12 }
  0x41   : > { %643 = vmatprep.subr.bf16.mxu0 %v2158_v13 }
  0x42   : > { %2022 = vmatpush3.bf16.msra.mxu1 %v2168_v40 }
  0x43   : > { %2023 = vmatprep.subr.bf16.mxu1 %v2284_v19 }
  0x44   : > { %644 = vmatpush1.bf16.msra.mxu0 %v2160_v14 }
  0x45   : > { %645 = vmatprep.subr.bf16.mxu0 %v2161_v15 }
  0x46   : > { %2024 = vmatpush3.bf16.msra.mxu1 %v2169_v41 }
  0x47   : > { %2025 = vmatprep.subr.bf16.mxu1 %v2284_v19 }
  0x48   : > { %646 = vmatpush1.bf16.msra.mxu0 %v2163_v16 }
  0x49   : > { %2033 = vmatprep.subr.bf16.mxu0 %v2284_v19 }
  0x4a   : > { %2026 = vmatpush3.bf16.msra.mxu1 %v2170_v44 }
  0x4b   : > { %664 = vmatmul.mubr.bf16.vlgmr.msra.gmra.mrb[0].mxu0 %v2467_v18  ;;  %2027 = vmatprep.subr.bf16.mxu1 %v2284_v19 }
  0x4c   : > { %2035 = vmatprep.mubr.msk.bf16.mxu0 %vm2285_vm0, %v2284_v19 }
  0x4e   : > { %2028 = vmatpush3.bf16.msra.mxu1 %v2171_v45 }
  0x4f   : > { %2039 = vmatprep.subr.bf16.mxu1 %v2284_v19 }
  0x51   : > { %2030 = vmatmul.mubr.bf16.vlgmr.msra.gmra.mrb[0].mxu1 %v2467_v18 }
  0x52   : > { %2041 = vmatprep.mubr.msk.bf16.mxu1 %vm2285_vm0, %v2284_v19 }
 0x11e   : > { %v665_v27 = vpop.f32.mrb[0].mxu0 }
 0x11f   : > { %v667_v28 = vpop.f32.mrb[1].mxu0  ;;  %v666_v32 = vadd.f32 %v665_v27, %v491_v26 }
 0x120   : > { %v668_v29 = vadd.f32 %v667_v28, %v495_v25  ;;  %v669_v30 = vpop.f32.mrb[2].mxu0  ;;  %v2175_v25 = vld [vmem:[#allocation2 + $0x18] sm:$0xff]  }
 0x121   : > { %v670_v31 = vpop.f32.mrb[3].mxu0  ;;  %v2497_v35 = vpack.c.bf16 %v666_v32, %v666_v32 }
 0x122   : > { %v2491_v33 = vpack.c.bf16 %v668_v29, %v668_v29  ;;  %v2172_v31 = vld [vmem:[#allocation2] sm:$0xff]  }
 0x124   : > { %832 = vrot.lane.b32.xlu0 %v2491_v33, %s2286_s20  ;;  %v720_v34 = vsel %vm715_vm1, %v2491_v33, 0  ;;  %v706_v62 = vpop.f32.mrb[0].mxu1 }
 0x125   : > { %2034 = vmatpush3.bf16.xpose.msra.mxu0 %v720_v34  ;;  %v2031_v63 = vpop.f32.mrb[1].mxu1  ;;  %v707_v7 = vadd.f32 %v706_v62, %v499_v6  ;;  %v2173_v34 = vld [vmem:[#allocation2 + $0x8] sm:$0xff]  }
 0x126   : > { %2045 = vmatprep.subr.bf16.mxu0 %v2284_v19  ;;  %v709_v1 = vpop.f32.mrb[2].mxu1 }
 0x127   : > { %v2032_v2 = vpop.f32.mrb[3].mxu1  ;;  %v2551_v8 = vpack.c.bf16 %v707_v7, %v707_v7 }
 0x128   : > { %829 = vrot.lane.b32.xlu0 %v2497_v35, %s2286_s20 }
 0x129   : > { %v781_v9 = vsel %vm779_vm3, %v2551_v8, 0 }
 0x12a   : > { %2040 = vmatpush3.bf16.msra.mxu1 %v781_v9  ;;  %v2176_v9 = vld [vmem:[#allocation2 + $0x20] sm:$0xff]  }
 0x12b   : > { %2051 = vmatprep.subr.bf16.mxu1 %v2284_v19 }
 0x12c   : > { %2036 = vmatmul.mubr.msk.bf16.vlgmr.msra.gmra.mrb[4].mxu0 %vm715_vm1, %v2497_v35 }
 0x12d   : > { %2047 = vmatprep.mubr.msk.bf16.mxu0 %vm2285_vm0, %v2284_v19 }
 0x196   : > { %v833_v42 = vpop.permute.xlu0 %832 }
 0x197   : > { %v838_v43 = vsel %vm715_vm1, %v833_v42, 0 }
 0x198   : > { %2046 = vmatpush3.bf16.xpose.msra.mxu0 %v838_v43 }
 0x199   : > { %2057 = vmatprep.subr.bf16.mxu0 %v2284_v19 }
 0x19a   : > { %v830_v46 = vpop.permute.xlu0 %829 }
 0x19f   : > { %2048 = vmatmul.mubr.msk.bf16.vlgmr.msra.gmra.mrb[8].mxu0 %vm715_vm1, %v830_v46 }
 0x1a0   : > { %2061 = vmatprep.mubr.msk.bf16.mxu0 %vm2285_vm0, %v2284_v19  ;;  %2058 = vmatpush3.bf16.msra.mxu0 %v2174_v23 }
 0x1a1   : > { %2059 = vmatprep.subr.bf16.mxu0 %v2284_v19 }
 0x1a4   : > { %2060 = vmatpush3.bf16.msra.mxu0 %v2175_v25 }
 0x1a5   : > { %2073 = vmatprep.subr.bf16.mxu0 %v2284_v19 }
 0x1ff   : > { %v756_v47 = vpop.f32.mrb[4].mxu0 }
 0x200   : > { %v762_v48 = vmul.f32 0.17677669, %v756_v47  ;;  %v2037_v49 = vpop.f32.mrb[5].mxu0 }
 0x201   : > { %v759_v50 = vpop.f32.mrb[6].mxu0 }
 0x202   : > { %v2038_v51 = vpop.f32.mrb[7].mxu0  ;;  %v764_v52 = vsel %vm763_vm2, %v762_v48, -inf }
 0x203   : > { %765 = vmax.xlane.f32.xlu1 %v764_v52 }
 0x272   : > { %v874_v53 = vpop.f32.mrb[8].mxu0 }
 0x273   : > { %v880_v54 = vmul.f32 0.17677669, %v874_v53  ;;  %v2049_v55 = vpop.f32.mrb[9].mxu0 }
 0x274   : > { %v877_v56 = vpop.f32.mrb[10].mxu0 }
 0x275   : > { %v2050_v57 = vpop.f32.mrb[11].mxu0  ;;  %v881_v58 = vsel %vm763_vm2, %v880_v54, -inf }
 0x276   : > { %882 = vmax.xlane.f32.xlu1 %v881_v58 }
 0x290   : > { %v766_v59 = vpop.xlane.xlu1 %765 }
 0x291   : > { %v767_v60 = vsub.f32 %v762_v48, %v766_v59 }
 0x293   : > { %v768_v61 = vmul.f32 1.442695, %v767_v60 }
 0x295   : > { %2220 = vpow2.f32 %v768_v61 }
 0x29f   : > { %v2221_v3 = vpop.eup %2220 }
 0x2a0   : > { %v770_v4 = vsel %vm763_vm2, %v2221_v3, 0.0 }
 0x2a1   : > { %771 = vadd.xlane.f32.xlu0 %v770_v4 }
 0x2b7   : > { %1120 = vrot.lane.b32.xlu0 %v2551_v8, %s2287_s24 }
 0x303   : > { %v883_v10 = vpop.xlane.xlu1 %882 }
 0x304   : > { %v884_v11 = vsub.f32 %v880_v54, %v883_v10 }
 0x306   : > { %v885_v12 = vmul.f32 1.442695, %v884_v11 }
 0x308   : > { %2222 = vpow2.f32 %v885_v12 }
 0x312   : > { %v2223_v13 = vpop.eup %2222 }
 0x313   : > { %v887_v14 = vsel %vm763_vm2, %v2223_v13, 0.0 }
 0x314   : > { %888 = vadd.xlane.f32.xlu1 %v887_v14 }
 0x325   : > { %894 = vrot.lane.b32.xlu1 %v2551_v8, %s2286_s20  ;;  %s2288_s20 = smov 32  }
 0x329   : > { %1059 = vrot.lane.b32.xlu1 %v2491_v33, %s2287_s24 }
 0x32d   : > { %1057 = vrot.lane.b32.xlu1 %v2497_v35, %s2287_s24 }
 0x32e   : > { %v772_v15 = vpop.xlane.xlu0 %771 }
 0x32f   : > { %2224 = vrcp.f32 %v772_v15 }
 0x332   : > { %v1121_v36 = vpop.permute.xlu0 %1120 }
 0x333   : > { %v1126_v41 = vsel %vm779_vm3, %v1121_v36, 0 }
 0x339   : > { %v2225_v16 = vpop.eup %2224 }
 0x33a   : > { %v774_v18 = vmul.f32 %v2225_v16, %v2221_v3 }
 0x33c   : > { %v775_v20 = vpack.c.bf16 %v774_v18, %v774_v18 }
 0x33e   : > { %2042 = vmatmul.mubr.msk.bf16.vlgmr.msra.gmra.mrb[4].mxu1 %vm763_vm2, %v775_v20 }
 0x33f   : > { %2053 = vmatprep.mubr.msk.bf16.mxu1 %vm2285_vm0, %v2284_v19 }
 0x3a1   : > { %v889_v26 = vpop.xlane.xlu1 %888 }
 0x3a2   : > { %2226 = vrcp.f32 %v889_v26 }
 0x3a5   : > { %v895_v27 = vpop.permute.xlu1 %894 }
 0x3a6   : > { %v900_v28 = vsel %vm779_vm3, %v895_v27, 0 }
 0x3a7   : > { %2052 = vmatpush3.bf16.msra.mxu1 %v900_v28 }
 0x3a8   : > { %2065 = vmatprep.subr.bf16.mxu1 %v2284_v19 }
 0x3a9   : > { %v1060_v43 = vpop.permute.xlu1 %1059 }
 0x3aa   : > { %v1065_v48 = vsel %vm715_vm1, %v1060_v43, 0 }
 0x3ac   : > { %v2227_v29 = vpop.eup %2226 }
 0x3ad   : > { %v891_v30 = vmul.f32 %v2227_v29, %v2223_v13  ;;  %v1058_v50 = vpop.permute.xlu1 %1057 }
 0x3af   : > { %v892_v32 = vpack.c.bf16 %v891_v30, %v891_v30 }
 0x3b1   : > { %2054 = vmatmul.mubr.msk.bf16.vlgmr.msra.gmra.mrb[8].mxu1 %vm763_vm2, %v892_v32 }
 0x3b2   : > { %2066 = vmatpush3.bf16.msra.mxu1 %v2172_v31  ;;  %2069 = vmatprep.mubr.msk.bf16.mxu1 %vm2285_vm0, %v2284_v19 }
 0x3b3   : > { %2067 = vmatprep.subr.bf16.mxu1 %v2284_v19 }
 0x3b6   : > { %2068 = vmatpush3.bf16.msra.mxu1 %v2173_v34 }
 0x3b7   : > { %2079 = vmatprep.subr.bf16.mxu1 %v2284_v19 }
 0x411   : > { %v817_v37 = vpop.f32.mrb[4].mxu1 }
 0x412   : > { %v823_v38 = vpack.c.bf16 %v817_v37, %v817_v37  ;;  %v2043_v39 = vpop.f32.mrb[5].mxu1 }
 0x413   : > { %v820_v40 = vpop.f32.mrb[6].mxu1  ;;  %v2178_v39 = vld [vmem:[#allocation2 + $0x30] sm:$0xff]  }
 0x414   : > { %v2044_v42 = vpop.f32.mrb[7].mxu1  ;;  %2070 = vmatmul.mubr.msk.bf16.vlgmr.msra.gmra.mrb[12].mxu1 %vm715_vm1, %v823_v38 }
 0x415   : > { %2080 = vmatpush3.bf16.msra.mxu1 %v1126_v41  ;;  %2081 = vmatprep.mubr.msk.bf16.mxu1 %vm2285_vm0, %v2284_v19 }
 0x416   : > { %2093 = vmatprep.subr.bf16.mxu1 %v2284_v19 }
 0x484   : > { %v936_v44 = vpop.f32.mrb[8].mxu1 }
 0x485   : > { %v942_v45 = vpack.c.bf16 %v936_v44, %v936_v44  ;;  %v2055_v46 = vpop.f32.mrb[9].mxu1 }
 0x486   : > { %v939_v47 = vpop.f32.mrb[10].mxu1 }
 0x487   : > { %v2056_v49 = vpop.f32.mrb[11].mxu1  ;;  %2062 = vmatmul.mubr.msk.bf16.vlgmr.msra.gmra.mrb[12].mxu0 %vm715_vm1, %v942_v45 }
 0x488   : > { %2074 = vmatpush3.bf16.xpose.msra.mxu0 %v1065_v48  ;;  %2075 = vmatprep.mubr.msk.bf16.mxu0 %vm2285_vm0, %v2284_v19 }
 0x489   : > { %2085 = vmatprep.subr.bf16.mxu0 %v2284_v19 }
 0x48f   : > { %2076 = vmatmul.mubr.msk.bf16.vlgmr.msra.gmra.mrb[16].mxu0 %vm715_vm1, %v1058_v50 }
 0x490   : > { %2089 = vmatprep.mubr.msk.bf16.mxu0 %vm2285_vm0, %v2284_v19  ;;  %2086 = vmatpush3.bf16.msra.mxu0 %v2176_v9  ;;  %v2191_v9 = vld [vmem:[%s2755_s7 + $0x34] ss:$8 sps:$4 sm:$0xff]  }
 0x491   : > { %2087 = vmatprep.subr.bf16.mxu0 %v2284_v19 }
 0x4e7   : > { %v1051_v51 = vpop.f32.mrb[12].mxu1 }
 0x4e8   : > { %v2071_v52 = vpop.f32.mrb[13].mxu1 }
 0x4e9   : > { %v1054_v53 = vpop.f32.mrb[14].mxu1 }
 0x4ea   : > { %v2072_v54 = vpop.f32.mrb[15].mxu1 }
 0x55a   : > { %v996_v55 = vpop.f32.mrb[12].mxu0 }
 0x55b   : > { %v2587_v56 = vadd.f32 %v1051_v51, %v996_v55  ;;  %v2063_v57 = vpop.f32.mrb[13].mxu0 }
 0x55c   : > { %v999_v58 = vpop.f32.mrb[14].mxu0 }
 0x55d   : > { %v2064_v59 = vpop.f32.mrb[15].mxu0 }
 0x562   : > { %v1101_v60 = vpop.f32.mrb[16].mxu0 }
 0x563   : > { %v1107_v61 = vmul.f32 0.17677669, %v1101_v60  ;;  %v2077_v62 = vpop.f32.mrb[17].mxu0 }
 0x564   : > { %v1104_v63 = vpop.f32.mrb[18].mxu0  ;;  %v2180_v62 = vld [vmem:[%s2755_s7] ss:$8 sps:$4 sm:$0xff]  }
 0x565   : > { %v2078_v1 = vpop.f32.mrb[19].mxu0  ;;  %v1108_v2 = vsel %vm763_vm2, %v1107_v61, -inf  ;;  %v2182_v63 = vld [vmem:[%s2755_s7 + $0x4] ss:$8 sps:$4 sm:$0xff]  }
 0x566   : > { %1109 = vmax.xlane.f32.xlu1 %v1108_v2  ;;  %v2185_v1 = vld [vmem:[%s2755_s7 + $0x14] ss:$8 sps:$4 sm:$0xff]   ;;  %v2183_v2 = vld [vmem:[%s2755_s7 + $0x10] ss:$8 sps:$4 sm:$0xff]  }
 0x5f3   : > { %v1110_v3 = vpop.xlane.xlu1 %1109 }
 0x5f4   : > { %v1111_v4 = vsub.f32 %v1107_v61, %v1110_v3  ;;  %v2186_v3 = vld [vmem:[%s2755_s7 + $0x20] ss:$8 sps:$4 sm:$0xff]  }
 0x5f6   : > { %v1112_v5 = vmul.f32 1.442695, %v1111_v4 }
 0x5f8   : > { %2228 = vpow2.f32 %v1112_v5 }
 0x602   : > { %v2229_v6 = vpop.eup %2228 }
 0x603   : > { %v1114_v7 = vsel %vm763_vm2, %v2229_v6, 0.0 }
 0x604   : > { %1115 = vadd.xlane.f32.xlu0 %v1114_v7 }
 0x61a   : > { %1231 = vrot.lane.b32.xlu0 %v2491_v33, %s2288_s20 }
 0x61e   : > { %1229 = vrot.lane.b32.xlu0 %v2497_v35, %s2288_s20  ;;  %v2177_v35 = vld [vmem:[#allocation2 + $0x28] sm:$0xff]  }
 0x61f   : > { %2088 = vmatpush3.bf16.msra.mxu0 %v2177_v35  ;;  %v2203_v35 = vld [vmem:[%s2755_s7 + $0x74] ss:$8 sps:$4 sm:$0xff]  }
 0x620   : > { %2099 = vmatprep.subr.bf16.mxu0 %v2284_v19 }
 0x691   : > { %v1116_v10 = vpop.xlane.xlu0 %1115 }
 0x692   : > { %2230 = vrcp.f32 %v1116_v10  ;;  %v2189_v10 = vld [vmem:[%s2755_s7 + $0x30] ss:$8 sps:$4 sm:$0xff]  }
 0x695   : > { %v1232_v13 = vpop.permute.xlu0 %1231 }
 0x696   : > { %v1237_v15 = vsel %vm715_vm1, %v1232_v13, 0  ;;  %v2197_v13 = vld [vmem:[%s2755_s7 + $0x54] ss:$8 sps:$4 sm:$0xff]  }
 0x699   : > { %v1230_v33 = vpop.permute.xlu0 %1229 }
 0x69c   : > { %v2231_v11 = vpop.eup %2230 }
 0x69d   : > { %v1118_v12 = vmul.f32 %v2231_v11, %v2229_v6  ;;  %v2194_v11 = vld [vmem:[%s2755_s7 + $0x44] ss:$8 sps:$4 sm:$0xff]  }
 0x69f   : > { %v1119_v14 = vpack.c.bf16 %v1118_v12, %v1118_v12  ;;  %v2192_v12 = vld [vmem:[%s2755_s7 + $0x40] ss:$8 sps:$4 sm:$0xff]  }
 0x6a1   : > { %2082 = vmatmul.mubr.msk.bf16.vlgmr.msra.gmra.mrb[16].mxu1 %vm763_vm2, %v1119_v14  ;;  %v2195_v14 = vld [vmem:[%s2755_s7 + $0x50] ss:$8 sps:$4 sm:$0xff]  }
 0x6a2   : > { %2094 = vmatpush3.bf16.xpose.msra.mxu1 %v1237_v15  ;;  %2095 = vmatprep.mubr.msk.bf16.mxu1 %vm2285_vm0, %v2284_v19  ;;  %v2200_v15 = vld [vmem:[%s2755_s7 + $0x64] ss:$8 sps:$4 sm:$0xff]  }
 0x6a3   : > { %2105 = vmatprep.subr.bf16.mxu1 %v2284_v19 }
 0x6a9   : > { %2096 = vmatmul.mubr.msk.bf16.vlgmr.msra.gmra.mrb[20].mxu1 %vm715_vm1, %v1230_v33  ;;  %v2198_v33 = vld [vmem:[%s2755_s7 + $0x60] ss:$8 sps:$4 sm:$0xff]  }
 0x6aa   : > { %2109 = vmatprep.mubr.msk.bf16.mxu1 %vm2285_vm0, %v2284_v19  ;;  %2106 = vmatpush3.bf16.msra.mxu1 %v2178_v39 }
 0x6ab   : > { %2107 = vmatprep.subr.bf16.mxu1 %v2284_v19 }
 0x774   : > { %v1162_v16 = vpop.f32.mrb[16].mxu1 }
 0x775   : > { %v1168_v18 = vpack.c.bf16 %v1162_v16, %v1162_v16  ;;  %v2083_v20 = vpop.f32.mrb[17].mxu1  ;;  %v2201_v16 = vld [vmem:[%s2755_s7 + $0x70] ss:$8 sps:$4 sm:$0xff]  }
 0x776   : > { %v1165_v23 = vpop.f32.mrb[18].mxu1  ;;  %v2205_v20 = vld [vmem:[%s2757_s9] sm:$0xff]  }
 0x777   : > { %v2084_v25 = vpop.f32.mrb[19].mxu1  ;;  %2090 = vmatmul.mubr.msk.bf16.vlgmr.msra.gmra.mrb[20].mxu0 %vm715_vm1, %v1168_v18  ;;  %v2204_v18 = vld [vmem:[%s2757_s9 + $0x40] sm:$0xff]   ;;  %v2206_v23 = vld [vmem:[%s2757_s9 + $0x48] sm:$0xff]  }
 0x778   : > { %2101 = vmatprep.mubr.msk.bf16.mxu0 %vm2285_vm0, %v2284_v19  ;;  %v2179_v19 = vld [vmem:[#allocation2 + $0x38] sm:$0xff]   ;;  %v2207_v25 = vld [vmem:[%s2757_s9 + $0x8] sm:$0xff]  }
 0x779   : > { %2108 = vmatpush3.bf16.msra.mxu1 %v2179_v19 }
 0x77a   : > { %1991 = vmatprep.subr.bf16.mxu1 %v2204_v18 }
 0x77c   : > { %v1273_v26 = vpop.f32.mrb[20].mxu1 }
 0x77d   : > { %v1279_v27 = vmul.f32 0.17677669, %v1273_v26  ;;  %v2097_v28 = vpop.f32.mrb[21].mxu1  ;;  %v2208_v26 = vld [vmem:[%s2757_s9 + $0x50] sm:$0xff]  }
 0x77e   : > { %v1276_v29 = vpop.f32.mrb[22].mxu1  ;;  %v2210_v28 = vld [vmem:[%s2757_s9 + $0x58] sm:$0xff]  }
 0x77f   : > { %v2098_v30 = vpop.f32.mrb[23].mxu1  ;;  %v1280_v31 = vsel %vm763_vm2, %v1279_v27, -inf  ;;  %v2211_v29 = vld [vmem:[%s2757_s9 + $0x18] sm:$0xff]  }
 0x780   : > { %1281 = vmax.xlane.f32.xlu0 %v1280_v31  ;;  %v2212_v30 = vld [vmem:[%s2757_s9 + $0x60] sm:$0xff]  }
 0x781   : > { %v2213_v31 = vld [vmem:[%s2757_s9 + $0x20] sm:$0xff]  }
 0x80d   : > { %v1282_v32 = vpop.xlane.xlu0 %1281 }
 0x80e   : > { %v1283_v34 = vsub.f32 %v1279_v27, %v1282_v32  ;;  %v2209_v27 = vld [vmem:[%s2757_s9 + $0x10] sm:$0xff]   ;;  %v2214_v32 = vld [vmem:[%s2757_s9 + $0x68] sm:$0xff]  }
 0x810   : > { %v1284_v36 = vmul.f32 1.442695, %v1283_v34  ;;  %v2215_v34 = vld [vmem:[%s2757_s9 + $0x28] sm:$0xff]  }
 0x812   : > { %2232 = vpow2.f32 %v1284_v36 }
 0x81c   : > { %v2233_v37 = vpop.eup %2232 }
 0x81d   : > { %v1286_v38 = vsel %vm763_vm2, %v2233_v37, 0.0 }
 0x81e   : > { %1287 = vadd.xlane.f32.xlu1 %v1286_v38 }
 0x82f   : > { %1292 = vrot.lane.b32.xlu1 %v2551_v8, %s2288_s20 }
 0x84a   : > { %v1222_v40 = vpop.f32.mrb[20].mxu0 }
 0x84b   : > { %v1228_v41 = vadd.f32 %v1222_v40, %v2587_v56  ;;  %v2091_v42 = vpop.f32.mrb[21].mxu0  ;;  %v1914_v56 = vld [vmem:[%s2752_s4] ss:$0 sm:$0xff] }
 0x84c   : > { %v1225_v43 = vpop.f32.mrb[22].mxu0  ;;  %v1915_v40 = vld [vmem:[%s2753_s5] ss:$0 sm:$0xff] }
 0x84d   : > { %v2092_v44 = vpop.f32.mrb[23].mxu0  ;;  %v1916_v42 = vld [vmem:[%s2754_s6] ss:$0 sm:$0xff] }
 0x8ab   : > { %v1288_v45 = vpop.xlane.xlu1 %1287 }
 0x8ac   : > { %2234 = vrcp.f32 %v1288_v45 }
 0x8af   : > { %v1293_v46 = vpop.permute.xlu1 %1292 }
 0x8b0   : > { %v1298_v47 = vsel %vm779_vm3, %v1293_v46, 0  ;;  %v2216_v46 = vld [vmem:[%s2757_s9 + $0x70] sm:$0xff]  }
 0x8b1   : > { %2100 = vmatpush3.bf16.msra.mxu0 %v1298_v47  ;;  %v2217_v47 = vld [vmem:[%s2757_s9 + $0x30] sm:$0xff]  }
 0x8b2   : > { %1547 = vmatprep.subr.bf16.mxu0 %v2182_v63 }
 0x8b6   : > { %v2235_v48 = vpop.eup %2234 }
 0x8b7   : > { %v1290_v49 = vmul.f32 %v2235_v48, %v2233_v37  ;;  %v2218_v48 = vld [vmem:[%s2757_s9 + $0x78] sm:$0xff]  }
 0x8b9   : > { %v1291_v50 = vpack.c.bf16 %v1290_v49, %v1290_v49  ;;  %v2219_v49 = vld [vmem:[%s2757_s9 + $0x38] sm:$0xff]  }
 0x8bb   : > { %2102 = vmatmul.mubr.msk.bf16.vlgmr.msra.gmra.mrb[24].mxu0 %vm763_vm2, %v1291_v50  ;;  %v1455_v50 = vld [vmem:[%s2756_s8] sm:$0x3] }
 0x8bc   : > { %1579 = vmatprep.mubr.bf16.mxu0 %v2283_v0  ;;  %1548 = vmatpush1.bf16.msra.mxu0 %v2180_v62  ;;  %v1460_v19 = vrot.slane %v1455_v50, %v490_v24  ;;  %v1933_v24 = vld [vmem:[%s2758_s10] ss:$0 sm:$0xff] }
 0x8bd   : > { %1549 = vmatprep.subr.bf16.mxu0 %v2185_v1 }
 0x8c0   : > { %1550 = vmatpush1.bf16.msra.mxu0 %v2183_v2 }
 0x98e   : > { %v1334_v8 = vpop.f32.mrb[24].mxu0 }
 0x98f   : > { %v1340_v51 = vpack.c.bf16 %v1334_v8, %v1334_v8  ;;  %v2103_v52 = vpop.f32.mrb[25].mxu0  ;;  %v1464_v8 = vrot.slane %v1455_v50, %v494_v22 }
 0x990   : > { %v1337_v53 = vpop.f32.mrb[26].mxu0 }
 0x991   : > { %v2104_v54 = vpop.f32.mrb[27].mxu0  ;;  %2110 = vmatmul.mubr.msk.bf16.vlgmr.msra.gmra.mrb[24].mxu1 %vm715_vm1, %v1340_v51 }
 0x992   : > { %1992 = vmatpush3.bf16.msra.mxu1 %v2205_v20 }
 0x993   : > { %1993 = vmatprep.subr.bf16.mxu1 %v2206_v23 }
 0x996   : > { %1994 = vmatpush3.bf16.msra.mxu1 %v2207_v25 }
 0x997   : > { %1995 = vmatprep.subr.bf16.mxu1 %v2208_v26 }
 0x99a   : > { %1996 = vmatpush3.bf16.msra.mxu1 %v2209_v27 }
 0x99b   : > { %1997 = vmatprep.subr.bf16.mxu1 %v2210_v28 }
 0x99e   : > { %1998 = vmatpush3.bf16.msra.mxu1 %v2211_v29 }
 0x99f   : > { %1999 = vmatprep.subr.bf16.mxu1 %v2212_v30 }
 0x9a2   : > { %2000 = vmatpush3.bf16.msra.mxu1 %v2213_v31 }
 0x9a3   : > { %2001 = vmatprep.subr.bf16.mxu1 %v2214_v32 }
 0x9a6   : > { %2002 = vmatpush3.bf16.msra.mxu1 %v2215_v34 }
 0x9a7   : > { %2003 = vmatprep.subr.bf16.mxu1 %v2216_v46 }
 0x9aa   : > { %2004 = vmatpush3.bf16.msra.mxu1 %v2217_v47 }
 0x9ab   : > { %2005 = vmatprep.subr.bf16.mxu1 %v2218_v48 }
 0x9ae   : > { %2006 = vmatpush3.bf16.msra.mxu1 %v2219_v49 }
 0xa64   : > { %v1394_v55 = vpop.f32.mrb[24].mxu1 }
 0xa65   : > { %v1400_v57 = vadd.f32 %v1394_v55, %v1228_v41  ;;  %v2111_v58 = vpop.f32.mrb[25].mxu1 }
 0xa66   : > { %v1397_v59 = vpop.f32.mrb[26].mxu1 }
 0xa67   : > { %v1408_v60 = vadd.f32 %v1914_v56, %v1400_v57  ;;  %v2112_v61 = vpop.f32.mrb[27].mxu1 }
 0xa69   : > { %v1409_v0 = vadd.f32 %v1408_v60, %v2463_v17  ;;  %v2188_v17 = vld [vmem:[%s2755_s7 + $0x24] ss:$8 sps:$4 sm:$0xff]  }
 0xa6a   : > { %1551 = vmatprep.subr.bf16.mxu0 %v2188_v17 }
 0xa6b   : > { %1412 = vadd.xlane.f32.xlu1 %v1409_v0  ;;  %1552 = vmatpush1.bf16.msra.mxu0 %v2186_v3 }
 0xa6c   : > { %1553 = vmatprep.subr.bf16.mxu0 %v2191_v9 }
 0xa6f   : > { %1554 = vmatpush1.bf16.msra.mxu0 %v2189_v10  ;;  %v1950_v10 = vld [vmem:[%s2759_s11] ss:$0 sm:$0xff] }
 0xa70   : > { %1555 = vmatprep.subr.bf16.mxu0 %v2194_v11 }
 0xa73   : > { %1556 = vmatpush1.bf16.msra.mxu0 %v2192_v12  ;;  %v1951_v12 = vld [vmem:[%s2760_s12] ss:$0 sm:$0xff] }
 0xa74   : > { %1557 = vmatprep.subr.bf16.mxu0 %v2197_v13 }
 0xa77   : > { %1558 = vmatpush1.bf16.msra.mxu0 %v2195_v14 }
 0xa78   : > { %1559 = vmatprep.subr.bf16.mxu0 %v2200_v15 }
 0xa7b   : > { %1560 = vmatpush1.bf16.msra.mxu0 %v2198_v33 }
 0xa7c   : > { %1561 = vmatprep.subr.bf16.mxu0 %v2203_v35 }
 0xa7f   : > { %1562 = vmatpush1.bf16.msra.mxu0 %v2201_v16 }
 0xaf8   : > { %v1413_v4 = vpop.xlane.xlu1 %1412 }
 0xaf9   : > { %v1415_v5 = vmul.f32 0.0078125, %v1413_v4 }
 0xafb   : > { %v1416_v6 = vsub.f32 %v1409_v0, %v1415_v5 }
 0xafd   : > { %v1417_v7 = vmul.f32 %v1416_v6, %v1416_v6 }
 0xaff   : > { %1418 = vadd.xlane.f32.xlu0 %v1417_v7 }
 0xb8c   : > { %v1419_v36 = vpop.xlane.xlu0 %1418 }
 0xb8d   : > { %v1420_v37 = vmul.f32 0.0078125, %v1419_v36 }
 0xb8f   : > { %v1421_v38 = vadd.f32 1e-05, %v1420_v37 }
 0xb91   : > { %2236 = vrsqrt.f32 %v1421_v38 }
 0xb9b   : > { %v2237_v39 = vpop.eup %2236 }
 0xb9c   : > { %v1423_v41 = vmul.f32 %v2237_v39, %v1416_v6 }
 0xb9e   : > { %v1430_v43 = vmul.f32 %v1915_v40, %v1423_v41 }
 0xba0   : > { %v1437_v44 = vadd.f32 %v1916_v42, %v1430_v43 }
 0xba2   : > { %v1438_v45 = vpack.c.bf16 %v1437_v44, %v1437_v44 }
 0xba4   : > { %1580 = vmatmul.mubr.bf16.vlgmr.msra.gmra.mrb[28].mxu0 %v1438_v45 }
 0xc77   : > { %v1581_v51 = vpop.f32.mrb[28].mxu0 }
 0xc78   : > { %v1582_v52 = vadd.f32 %v1581_v51, %v1460_v19  ;;  %v1583_v53 = vpop.f32.mrb[29].mxu0 }
 0xc79   : > { %v1584_v54 = vadd.f32 %v1583_v53, %v1464_v8  ;;  %v1585_v55 = vpop.f32.mrb[30].mxu0 }
 0xc7a   : > { %v1588_v56 = vmax.f32 %v1582_v52, 0.0  ;;  %v1586_v57 = vpop.f32.mrb[31].mxu0 }
 0xc7b   : > { %v1589_v58 = vmax.f32 %v1584_v54, 0.0 }
 0xc7c   : > { %v1590_v60 = vpack.c.bf16 %v1588_v56, %v1588_v56 }
 0xc7d   : > { %v1591_v59 = vpack.c.bf16 %v1589_v58, %v1589_v58 }
 0xc7f   : > { %1759 = vmatprep.mubr.bf16.mxu1 %v1591_v59 }
 0xc80   : > { %1760 = vmatmul.mubr.bf16.vlgmr.msra.gmra.mrb[28].mxu1 %v1590_v60 }
 0xd53   : > { %v2007_v61 = vpop.f32.mrb[28].mxu1 }
 0xd54   : > { %v2008_v0 = vpop.f32.mrb[29].mxu1 }
 0xd55   : > { %v2009_v21 = vadd.f32 %v2008_v0, %v2007_v61  ;;  %v2010_v22 = vpop.f32.mrb[30].mxu1 }
 0xd56   : > { %v2011_v62 = vpop.f32.mrb[31].mxu1 }
 0xd57   : > { %v1762_v63 = vadd.f32 %v2009_v21, %v1933_v24 }
 0xd59   : > { %v1767_v1 = vadd.f32 %v1762_v63, %v1437_v44 }
 0xd5b   : > { %1770 = vadd.xlane.f32.xlu0 %v1767_v1 }
 0xde8   : > { %v1771_v2 = vpop.xlane.xlu0 %1770 }
 0xde9   : > { %v1772_v17 = vmul.f32 0.0078125, %v1771_v2 }
 0xdeb   : > { %v1773_v3 = vsub.f32 %v1767_v1, %v1772_v17 }
 0xded   : > { %v1774_v4 = vmul.f32 %v1773_v3, %v1773_v3 }
 0xdef   : > { %1775 = vadd.xlane.f32.xlu0 %v1774_v4 }
 0xe7c   : > { %v1776_v5 = vpop.xlane.xlu0 %1775 }
 0xe7d   : > { %v1777_v6 = vmul.f32 0.0078125, %v1776_v5 }
 0xe7f   : > { %v1778_v7 = vadd.f32 1e-05, %v1777_v6 }
 0xe81   : > { %2238 = vrsqrt.f32 %v1778_v7 }
 0xe8b   : > { %v2239_v9 = vpop.eup %2238 }
 0xe8c   : > { %v1780_v11 = vmul.f32 %v2239_v9, %v1773_v3 }
 0xe8e   : > { %v1787_v13 = vmul.f32 %v1950_v10, %v1780_v11 }
 0xe90   : > { %v1794_v14 = vadd.f32 %v1951_v12, %v1787_v13 }
 0xe92   : > { %1795 = vst [vmem:[%s450_s22] sm:$0xff] %v1794_v14 }
 0xe93 PF: > { %s24_s25 = sadd.s32 1, %s2278_s25  }
 0xe94   : > { %p21_p3 = scmp.ge.s32.totalorder %s24_s25, 4  }
 0xe96   :  { %23 = sbr.rel (!%p21_p3) target bundleno = 1 (0x1), region = 107 }
 0xe9d   :  { %1815 = vsyncpa [#allocation3], 1 }
 0xe9e   :  { %1817 = vsyncpa [#allocation3 + $0x1], 1 }

// kernel: transformer_question_encoder.5
= control target key start
LH: loop header
LB: loop body
LE: loop exit
PB: predicated region body
PF: predicated region fallthrough
CT: control target
= control target key end

     0   :  { %s2377_s18 = smov 0   ;;  %s2757_s0 = inlined_call_operand.vmem [shape: f32[2,8,128], index: 0, kind: input, shape index: {}]   ;;  %s2758_s1 = inlined_call_operand.vmem [shape: bf16[128,384], index: 1, kind: input, shape index: {}]   ;;  %s2759_s2 = inlined_call_operand.vmem [shape: f32[1,384], index: 2, kind: input, shape index: {}]   ;;  %s2760_s3 = inlined_call_operand.vmem [shape: bf16[128,128], index: 3, kind: input, shape index: {}]   ;;  %s2761_s4 = inlined_call_operand.vmem [shape: f32[1,128], index: 4, kind: input, shape index: {}]   ;;  %s2762_s5 = inlined_call_operand.vmem [shape: f32[1,128], index: 5, kind: input, shape index: {}]   ;;  %s2763_s6 = inlined_call_operand.vmem [shape: f32[1,128], index: 6, kind: input, shape index: {}]   ;;  %s2764_s7 = inlined_call_operand.vmem [shape: bf16[128,256], index: 7, kind: input, shape index: {}]   ;;  %s2765_s8 = inlined_call_operand.vmem [shape: f32[1,256], index: 8, kind: input, shape index: {}]   ;;  %s2766_s9 = inlined_call_operand.vmem [shape: bf16[256,128], index: 9, kind: input, shape index: {}]   ;;  %s2767_s10 = inlined_call_operand.vmem [shape: f32[1,128], index: 10, kind: input, shape index: {}]   ;;  %s2768_s11 = inlined_call_operand.vmem [shape: f32[1,128], index: 11, kind: input, shape index: {}]   ;;  %s2769_s12 = inlined_call_operand.vmem [shape: f32[1,128], index: 12, kind: input, shape index: {}]   ;;  %s2770_s13 = inlined_call_operand.vmem [shape: f32[1,128], index: 13, kind: input, shape index: {}]   ;;  %s2771_s14 = inlined_call_operand.vmem [shape: f32[1,128], index: 14, kind: input, shape index: {}]   ;;  %s2772_s15 = inlined_call_operand.vmem [shape: f32[2,8,128], index: 15, kind: output, shape index: {}]  }
   0x1 LB: > { %s1915_s19 = sadd.s32 4294967295, %s2289_s18   ;;  %p1919_p0 = scmp.ge.s32.totalorder %s2289_s18, 1  ;;  %s2289_s18 = sphi %s2377_s18, %s25_s18  }
   0x2   : > { %p436_p1 = scmp.lt.s32.totalorder %s2289_s18, 3 }
   0x4   : > { %p437_p2 = pnand %p1919_p0, %p436_p1 }
   0x5   : > { %v2181_v0 = vld [vmem:[%s2758_s1 + $0x4] ss:$12 sps:$4 sm:$0xff] (!%p437_p2)   ;;  %v2183_v1 = vld [vmem:[%s2758_s1] ss:$12 sps:$4 sm:$0xff] (!%p437_p2)   ;;  %v2291_v2 = vmov (!%p437_p2), 0   ;;  %p482_p3 = scmp.lt.s32.totalorder (!%p437_p2), %s1915_s19, 1  ;;  %v527_v20 = vlaneseq (!%p437_p2) }
   0x6   : > { %440 = sbr.rel (%p437_p2) target bundleno = 4005 (0xfa5), region = 80  ;;  %702 = vmatprep.mubr.bf16.mxu0 (!%p437_p2), %v2291_v2  ;;  %670 = vmatprep.subr.bf16.mxu0 (!%p437_p2), %v2181_v0  ;;  %v2184_v3 = vld [vmem:[%s2758_s1 + $0x1c] ss:$12 sps:$4 sm:$0xff] (!%p437_p2)   ;;  %v2186_v4 = vld [vmem:[%s2758_s1 + $0x18] ss:$12 sps:$4 sm:$0xff] (!%p437_p2)   ;;  %v2292_v19 = vmov (!%p437_p2), 0.0  }
   0x7   : > { %671 = vmatpush1.bf16.msra.mxu0 (!%p437_p2), %v2183_v1  ;;  %v2187_v5 = vld [vmem:[%s2758_s1 + $0x34] ss:$12 sps:$4 sm:$0xff] (!%p437_p2)   ;;  %v2189_v6 = vld [vmem:[%s2758_s1 + $0x30] ss:$12 sps:$4 sm:$0xff] (!%p437_p2)   ;;  %v2190_v7 = vld [vmem:[%s2758_s1 + $0x4c] ss:$12 sps:$4 sm:$0xff] (!%p437_p2)   ;;  %2067 = vmatprep.subr.bf16.mxu1 (!%p437_p2), %v2292_v19 }
   0x8   : > { %672 = vmatprep.subr.bf16.mxu0 (!%p437_p2), %v2184_v3  ;;  %v2192_v8 = vld [vmem:[%s2758_s1 + $0x48] ss:$12 sps:$4 sm:$0xff] (!%p437_p2)   ;;  %v2193_v9 = vld [vmem:[%s2758_s1 + $0x64] ss:$12 sps:$4 sm:$0xff] (!%p437_p2)   ;;  %v2195_v10 = vld [vmem:[%s2758_s1 + $0x60] ss:$12 sps:$4 sm:$0xff] (!%p437_p2)  }
   0x9   : > { %v2196_v11 = vld [vmem:[%s2758_s1 + $0x7c] ss:$12 sps:$4 sm:$0xff] (!%p437_p2)   ;;  %v2198_v12 = vld [vmem:[%s2758_s1 + $0x78] ss:$12 sps:$4 sm:$0xff] (!%p437_p2)   ;;  %v2199_v13 = vld [vmem:[%s2758_s1 + $0x94] ss:$12 sps:$4 sm:$0xff] (!%p437_p2)  }
   0xa   : > { %v2201_v14 = vld [vmem:[%s2758_s1 + $0x90] ss:$12 sps:$4 sm:$0xff] (!%p437_p2)   ;;  %v2202_v15 = vld [vmem:[%s2758_s1 + $0xac] ss:$12 sps:$4 sm:$0xff] (!%p437_p2)   ;;  %v2204_v16 = vld [vmem:[%s2758_s1 + $0xa8] ss:$12 sps:$4 sm:$0xff] (!%p437_p2)  }
   0xb   : > { %673 = vmatpush1.bf16.msra.mxu0 (!%p437_p2), %v2186_v4  ;;  %vm2293_vm0 = vmmov (!%p437_p2), 0   ;;  %v2455_v21 = vshrl.u32 (!%p437_p2), %v527_v20, 7  ;;  %v2461_v23 = vld [vmem:[%s2759_s2] sm:$0x7] (!%p437_p2)  ;;  %vm754_vm1 = vcmask (!%p437_p2), 261120   ;;  %s2294_s20 = smov (!%p437_p2), 96  }
   0xc   : > { %674 = vmatprep.subr.bf16.mxu0 (!%p437_p2), %v2187_v5  ;;  %2083 = vmatprep.mubr.msk.bf16.mxu1 (!%p437_p2), %vm2293_vm0, %v2292_v19  ;;  %v2205_v36 = vld [vmem:[%s2758_s1 + $0x8] ss:$12 sps:$4 sm:$0xff] (!%p437_p2)   ;;  %v2206_v37 = vld [vmem:[%s2758_s1 + $0x20] ss:$12 sps:$4 sm:$0xff] (!%p437_p2)   ;;  %v2207_v38 = vld [vmem:[%s2758_s1 + $0x38] ss:$12 sps:$4 sm:$0xff] (!%p437_p2)  }
   0xd   : > { %s2774_s19 = smov (!%p482_p3, %s1915_s19), 1  ;;  %v533_v22 = vsub.s32 1, %v2455_v21  ;;  %v529_v24 = vsub.s32 0, %v2455_v21  ;;  %2068 = vmatpush3.bf16.msra.mxu1 %v2205_v36  ;;  %v2208_v39 = vld [vmem:[%s2758_s1 + $0x50] ss:$12 sps:$4 sm:$0xff]   ;;  %vm802_vm2 = vcmask 64512  }
   0xe   : > { %s1920_s23 = sshll.u32 %s2774_s19, 3  ;;  %2069 = vmatprep.subr.bf16.mxu1 %v2292_v19  ;;  %v2209_v40 = vld [vmem:[%s2758_s1 + $0x68] ss:$12 sps:$4 sm:$0xff]   ;;  %v2210_v41 = vld [vmem:[%s2758_s1 + $0x80] ss:$12 sps:$4 sm:$0xff]   ;;  %v537_v5 = vsub.s32 2, %v2455_v21 }
   0xf   : > { %675 = vmatpush1.bf16.msra.mxu0 %v2189_v6  ;;  %s485_s28 = scalar_lea.vmem %s2757_s0, %s1920_s23  ;;  %v534_v25 = vrot.slane %v2461_v23, %v533_v22  ;;  %v530_v26 = vrot.slane %v2461_v23, %v529_v24  ;;  %v2211_v44 = vld [vmem:[%s2758_s1 + $0x98] ss:$12 sps:$4 sm:$0xff]   ;;  %v2212_v45 = vld [vmem:[%s2758_s1 + $0xb0] ss:$12 sps:$4 sm:$0xff]   ;;  %s2295_s27 = smov 64   ;;  %vm818_vm3 = vcmask 1043456  }
  0x10   : > { %676 = vmatprep.subr.bf16.mxu0 %v2190_v7  ;;  %v2442_v17 = vld [vmem:[%s485_s28] sm:$0xff]  ;;  %v538_v6 = vrot.slane %v2461_v23, %v537_v5  ;;  %v2215_v23 = vld [vmem:[%s2760_s3 + $0x10] sm:$0xff]   ;;  %s2296_s24 = smov 32   ;;  %s489_s17 = scalar_lea.vmem %s2772_s15, %s1920_s23 }
  0x11   : > { %v2446_v18 = vpack.c.bf16 %v2442_v17, %v2442_v17  ;;  %2070 = vmatpush3.bf16.msra.mxu1 %v2206_v37 }
  0x12   : > { %2071 = vmatprep.subr.bf16.mxu1 %v2292_v19 }
  0x13   : > { %677 = vmatpush1.bf16.msra.mxu0 %v2192_v8 }
  0x14   : > { %678 = vmatprep.subr.bf16.mxu0 %v2193_v9 }
  0x15   : > { %2072 = vmatpush3.bf16.msra.mxu1 %v2207_v38 }
  0x16   : > { %2073 = vmatprep.subr.bf16.mxu1 %v2292_v19 }
  0x17   : > { %679 = vmatpush1.bf16.msra.mxu0 %v2195_v10 }
  0x18   : > { %680 = vmatprep.subr.bf16.mxu0 %v2196_v11 }
  0x19   : > { %2074 = vmatpush3.bf16.msra.mxu1 %v2208_v39 }
  0x1a   : > { %2075 = vmatprep.subr.bf16.mxu1 %v2292_v19 }
  0x1b   : > { %681 = vmatpush1.bf16.msra.mxu0 %v2198_v12 }
  0x1c   : > { %682 = vmatprep.subr.bf16.mxu0 %v2199_v13 }
  0x1d   : > { %2076 = vmatpush3.bf16.msra.mxu1 %v2209_v40 }
  0x1e   : > { %2077 = vmatprep.subr.bf16.mxu1 %v2292_v19 }
  0x1f   : > { %683 = vmatpush1.bf16.msra.mxu0 %v2201_v14 }
  0x20   : > { %684 = vmatprep.subr.bf16.mxu0 %v2202_v15 }
  0x21   : > { %2078 = vmatpush3.bf16.msra.mxu1 %v2210_v41 }
  0x22   : > { %2079 = vmatprep.subr.bf16.mxu1 %v2292_v19 }
  0x23   : > { %685 = vmatpush1.bf16.msra.mxu0 %v2204_v16 }
  0x24   : > { %2087 = vmatprep.subr.bf16.mxu0 %v2292_v19 }
  0x25   : > { %2080 = vmatpush3.bf16.msra.mxu1 %v2211_v44 }
  0x26   : > { %703 = vmatmul.mubr.bf16.vlgmr.msra.gmra.mrb[0].mxu0 %v2446_v18  ;;  %2081 = vmatprep.subr.bf16.mxu1 %v2292_v19 }
  0x27   : > { %2089 = vmatprep.mubr.msk.bf16.mxu0 %vm2293_vm0, %v2292_v19 }
  0x29   : > { %2082 = vmatpush3.bf16.msra.mxu1 %v2212_v45 }
  0x2a   : > { %2093 = vmatprep.subr.bf16.mxu1 %v2292_v19 }
  0x2c   : > { %2084 = vmatmul.mubr.bf16.vlgmr.msra.gmra.mrb[0].mxu1 %v2446_v18 }
  0x2d   : > { %2095 = vmatprep.mubr.msk.bf16.mxu1 %vm2293_vm0, %v2292_v19 }
  0xf9   : > { %v704_v27 = vpop.f32.mrb[0].mxu0 }
  0xfa   : > { %v706_v28 = vpop.f32.mrb[1].mxu0  ;;  %v705_v32 = vadd.f32 %v704_v27, %v530_v26 }
  0xfb   : > { %v707_v29 = vadd.f32 %v706_v28, %v534_v25  ;;  %v708_v30 = vpop.f32.mrb[2].mxu0  ;;  %v2216_v25 = vld [vmem:[%s2760_s3 + $0x18] sm:$0xff]  }
  0xfc   : > { %v709_v31 = vpop.f32.mrb[3].mxu0  ;;  %v2476_v35 = vpack.c.bf16 %v705_v32, %v705_v32 }
  0xfd   : > { %v2470_v33 = vpack.c.bf16 %v707_v29, %v707_v29  ;;  %v2213_v31 = vld [vmem:[%s2760_s3] sm:$0xff]  }
  0xff   : > { %871 = vrot.lane.b32.xlu0 %v2470_v33, %s2294_s20  ;;  %v759_v34 = vsel %vm754_vm1, %v2470_v33, 0  ;;  %v745_v62 = vpop.f32.mrb[0].mxu1 }
 0x100   : > { %2088 = vmatpush3.bf16.xpose.msra.mxu0 %v759_v34  ;;  %v2085_v63 = vpop.f32.mrb[1].mxu1  ;;  %v746_v7 = vadd.f32 %v745_v62, %v538_v6  ;;  %v2214_v34 = vld [vmem:[%s2760_s3 + $0x8] sm:$0xff]  }
 0x101   : > { %2099 = vmatprep.subr.bf16.mxu0 %v2292_v19  ;;  %v748_v0 = vpop.f32.mrb[2].mxu1 }
 0x102   : > { %v2086_v1 = vpop.f32.mrb[3].mxu1  ;;  %v2530_v8 = vpack.c.bf16 %v746_v7, %v746_v7 }
 0x103   : > { %868 = vrot.lane.b32.xlu0 %v2476_v35, %s2294_s20 }
 0x104   : > { %v820_v9 = vsel %vm818_vm3, %v2530_v8, 0 }
 0x105   : > { %2094 = vmatpush3.bf16.msra.mxu1 %v820_v9  ;;  %v2217_v9 = vld [vmem:[%s2760_s3 + $0x20] sm:$0xff]  }
 0x106   : > { %2105 = vmatprep.subr.bf16.mxu1 %v2292_v19 }
 0x107   : > { %2090 = vmatmul.mubr.msk.bf16.vlgmr.msra.gmra.mrb[4].mxu0 %vm754_vm1, %v2476_v35 }
 0x108   : > { %2101 = vmatprep.mubr.msk.bf16.mxu0 %vm2293_vm0, %v2292_v19 }
 0x171   : > { %v872_v42 = vpop.permute.xlu0 %871 }
 0x172   : > { %v877_v43 = vsel %vm754_vm1, %v872_v42, 0 }
 0x173   : > { %2100 = vmatpush3.bf16.xpose.msra.mxu0 %v877_v43 }
 0x174   : > { %2111 = vmatprep.subr.bf16.mxu0 %v2292_v19 }
 0x175   : > { %v869_v46 = vpop.permute.xlu0 %868 }
 0x17a   : > { %2102 = vmatmul.mubr.msk.bf16.vlgmr.msra.gmra.mrb[8].mxu0 %vm754_vm1, %v869_v46 }
 0x17b   : > { %2115 = vmatprep.mubr.msk.bf16.mxu0 %vm2293_vm0, %v2292_v19  ;;  %2112 = vmatpush3.bf16.msra.mxu0 %v2215_v23 }
 0x17c   : > { %2113 = vmatprep.subr.bf16.mxu0 %v2292_v19 }
 0x17f   : > { %2114 = vmatpush3.bf16.msra.mxu0 %v2216_v25 }
 0x180   : > { %2127 = vmatprep.subr.bf16.mxu0 %v2292_v19 }
 0x1da   : > { %v795_v47 = vpop.f32.mrb[4].mxu0 }
 0x1db   : > { %v801_v48 = vmul.f32 0.17677669, %v795_v47  ;;  %v2091_v49 = vpop.f32.mrb[5].mxu0 }
 0x1dc   : > { %v798_v50 = vpop.f32.mrb[6].mxu0 }
 0x1dd   : > { %v2092_v51 = vpop.f32.mrb[7].mxu0  ;;  %v803_v52 = vsel %vm802_vm2, %v801_v48, -inf }
 0x1de   : > { %804 = vmax.xlane.f32.xlu1 %v803_v52 }
 0x24d   : > { %v913_v53 = vpop.f32.mrb[8].mxu0 }
 0x24e   : > { %v919_v54 = vmul.f32 0.17677669, %v913_v53  ;;  %v2103_v55 = vpop.f32.mrb[9].mxu0 }
 0x24f   : > { %v916_v56 = vpop.f32.mrb[10].mxu0 }
 0x250   : > { %v2104_v57 = vpop.f32.mrb[11].mxu0  ;;  %v920_v58 = vsel %vm802_vm2, %v919_v54, -inf }
 0x251   : > { %921 = vmax.xlane.f32.xlu1 %v920_v58 }
 0x26b   : > { %v805_v59 = vpop.xlane.xlu1 %804 }
 0x26c   : > { %v806_v60 = vsub.f32 %v801_v48, %v805_v59 }
 0x26e   : > { %v807_v61 = vmul.f32 1.442695, %v806_v60 }
 0x270   : > { %2261 = vpow2.f32 %v807_v61 }
 0x27a   : > { %v2262_v3 = vpop.eup %2261 }
 0x27b   : > { %v809_v4 = vsel %vm802_vm2, %v2262_v3, 0.0 }
 0x27c   : > { %810 = vadd.xlane.f32.xlu0 %v809_v4 }
 0x292   : > { %1159 = vrot.lane.b32.xlu0 %v2530_v8, %s2295_s27 }
 0x2de   : > { %v922_v10 = vpop.xlane.xlu1 %921 }
 0x2df   : > { %v923_v11 = vsub.f32 %v919_v54, %v922_v10 }
 0x2e1   : > { %v924_v12 = vmul.f32 1.442695, %v923_v11 }
 0x2e3   : > { %2263 = vpow2.f32 %v924_v12 }
 0x2ed   : > { %v2264_v13 = vpop.eup %2263 }
 0x2ee   : > { %v926_v14 = vsel %vm802_vm2, %v2264_v13, 0.0 }
 0x2ef   : > { %927 = vadd.xlane.f32.xlu1 %v926_v14 }
 0x300   : > { %933 = vrot.lane.b32.xlu1 %v2530_v8, %s2294_s20 }
 0x304   : > { %1098 = vrot.lane.b32.xlu1 %v2470_v33, %s2295_s27 }
 0x308   : > { %1096 = vrot.lane.b32.xlu1 %v2476_v35, %s2295_s27 }
 0x309   : > { %v811_v15 = vpop.xlane.xlu0 %810 }
 0x30a   : > { %2265 = vrcp.f32 %v811_v15 }
 0x30d   : > { %v1160_v36 = vpop.permute.xlu0 %1159 }
 0x30e   : > { %v1165_v41 = vsel %vm818_vm3, %v1160_v36, 0 }
 0x314   : > { %v2266_v16 = vpop.eup %2265 }
 0x315   : > { %v813_v18 = vmul.f32 %v2266_v16, %v2262_v3 }
 0x317   : > { %v814_v20 = vpack.c.bf16 %v813_v18, %v813_v18 }
 0x319   : > { %2096 = vmatmul.mubr.msk.bf16.vlgmr.msra.gmra.mrb[4].mxu1 %vm802_vm2, %v814_v20 }
 0x31a   : > { %2107 = vmatprep.mubr.msk.bf16.mxu1 %vm2293_vm0, %v2292_v19 }
 0x37c   : > { %v928_v26 = vpop.xlane.xlu1 %927 }
 0x37d   : > { %2267 = vrcp.f32 %v928_v26 }
 0x380   : > { %v934_v27 = vpop.permute.xlu1 %933 }
 0x381   : > { %v939_v28 = vsel %vm818_vm3, %v934_v27, 0 }
 0x382   : > { %2106 = vmatpush3.bf16.msra.mxu1 %v939_v28 }
 0x383   : > { %2119 = vmatprep.subr.bf16.mxu1 %v2292_v19 }
 0x384   : > { %v1099_v43 = vpop.permute.xlu1 %1098 }
 0x385   : > { %v1104_v48 = vsel %vm754_vm1, %v1099_v43, 0 }
 0x387   : > { %v2268_v29 = vpop.eup %2267 }
 0x388   : > { %v930_v30 = vmul.f32 %v2268_v29, %v2264_v13  ;;  %v1097_v50 = vpop.permute.xlu1 %1096 }
 0x38a   : > { %v931_v32 = vpack.c.bf16 %v930_v30, %v930_v30 }
 0x38c   : > { %2108 = vmatmul.mubr.msk.bf16.vlgmr.msra.gmra.mrb[8].mxu1 %vm802_vm2, %v931_v32 }
 0x38d   : > { %2120 = vmatpush3.bf16.msra.mxu1 %v2213_v31  ;;  %2123 = vmatprep.mubr.msk.bf16.mxu1 %vm2293_vm0, %v2292_v19 }
 0x38e   : > { %2121 = vmatprep.subr.bf16.mxu1 %v2292_v19 }
 0x391   : > { %2122 = vmatpush3.bf16.msra.mxu1 %v2214_v34 }
 0x392   : > { %2133 = vmatprep.subr.bf16.mxu1 %v2292_v19 }
 0x3ec   : > { %v856_v37 = vpop.f32.mrb[4].mxu1 }
 0x3ed   : > { %v862_v38 = vpack.c.bf16 %v856_v37, %v856_v37  ;;  %v2097_v39 = vpop.f32.mrb[5].mxu1 }
 0x3ee   : > { %v859_v40 = vpop.f32.mrb[6].mxu1  ;;  %v2219_v39 = vld [vmem:[%s2760_s3 + $0x30] sm:$0xff]  }
 0x3ef   : > { %v2098_v42 = vpop.f32.mrb[7].mxu1  ;;  %2124 = vmatmul.mubr.msk.bf16.vlgmr.msra.gmra.mrb[12].mxu1 %vm754_vm1, %v862_v38 }
 0x3f0   : > { %2134 = vmatpush3.bf16.msra.mxu1 %v1165_v41  ;;  %2135 = vmatprep.mubr.msk.bf16.mxu1 %vm2293_vm0, %v2292_v19 }
 0x3f1   : > { %2147 = vmatprep.subr.bf16.mxu1 %v2292_v19 }
 0x45f   : > { %v975_v44 = vpop.f32.mrb[8].mxu1 }
 0x460   : > { %v981_v45 = vpack.c.bf16 %v975_v44, %v975_v44  ;;  %v2109_v46 = vpop.f32.mrb[9].mxu1 }
 0x461   : > { %v978_v47 = vpop.f32.mrb[10].mxu1 }
 0x462   : > { %v2110_v49 = vpop.f32.mrb[11].mxu1  ;;  %2116 = vmatmul.mubr.msk.bf16.vlgmr.msra.gmra.mrb[12].mxu0 %vm754_vm1, %v981_v45 }
 0x463   : > { %2128 = vmatpush3.bf16.xpose.msra.mxu0 %v1104_v48  ;;  %2129 = vmatprep.mubr.msk.bf16.mxu0 %vm2293_vm0, %v2292_v19 }
 0x464   : > { %2139 = vmatprep.subr.bf16.mxu0 %v2292_v19 }
 0x46a   : > { %2130 = vmatmul.mubr.msk.bf16.vlgmr.msra.gmra.mrb[16].mxu0 %vm754_vm1, %v1097_v50 }
 0x46b   : > { %2143 = vmatprep.mubr.msk.bf16.mxu0 %vm2293_vm0, %v2292_v19  ;;  %2140 = vmatpush3.bf16.msra.mxu0 %v2217_v9  ;;  %v2232_v9 = vld [vmem:[%s2764_s7 + $0x34] ss:$8 sps:$4 sm:$0xff]  }
 0x46c   : > { %2141 = vmatprep.subr.bf16.mxu0 %v2292_v19 }
 0x4c2   : > { %v1090_v51 = vpop.f32.mrb[12].mxu1 }
 0x4c3   : > { %v2125_v52 = vpop.f32.mrb[13].mxu1 }
 0x4c4   : > { %v1093_v53 = vpop.f32.mrb[14].mxu1 }
 0x4c5   : > { %v2126_v54 = vpop.f32.mrb[15].mxu1 }
 0x535   : > { %v1035_v55 = vpop.f32.mrb[12].mxu0 }
 0x536   : > { %v2578_v56 = vadd.f32 %v1090_v51, %v1035_v55  ;;  %v2117_v57 = vpop.f32.mrb[13].mxu0 }
 0x537   : > { %v1038_v58 = vpop.f32.mrb[14].mxu0 }
 0x538   : > { %v2118_v59 = vpop.f32.mrb[15].mxu0 }
 0x53d   : > { %v1140_v60 = vpop.f32.mrb[16].mxu0 }
 0x53e   : > { %v1146_v61 = vmul.f32 0.17677669, %v1140_v60  ;;  %v2131_v62 = vpop.f32.mrb[17].mxu0 }
 0x53f   : > { %v1143_v63 = vpop.f32.mrb[18].mxu0  ;;  %v2221_v62 = vld [vmem:[%s2764_s7] ss:$8 sps:$4 sm:$0xff]  }
 0x540   : > { %v2132_v0 = vpop.f32.mrb[19].mxu0  ;;  %v1147_v1 = vsel %vm802_vm2, %v1146_v61, -inf  ;;  %v2223_v63 = vld [vmem:[%s2764_s7 + $0x4] ss:$8 sps:$4 sm:$0xff]  }
 0x541   : > { %1148 = vmax.xlane.f32.xlu1 %v1147_v1  ;;  %v2226_v0 = vld [vmem:[%s2764_s7 + $0x14] ss:$8 sps:$4 sm:$0xff]   ;;  %v2224_v1 = vld [vmem:[%s2764_s7 + $0x10] ss:$8 sps:$4 sm:$0xff]  }
 0x5ce   : > { %v1149_v3 = vpop.xlane.xlu1 %1148 }
 0x5cf   : > { %v1150_v4 = vsub.f32 %v1146_v61, %v1149_v3  ;;  %v2227_v3 = vld [vmem:[%s2764_s7 + $0x20] ss:$8 sps:$4 sm:$0xff]  }
 0x5d1   : > { %v1151_v5 = vmul.f32 1.442695, %v1150_v4 }
 0x5d3   : > { %2269 = vpow2.f32 %v1151_v5 }
 0x5dd   : > { %v2270_v6 = vpop.eup %2269 }
 0x5de   : > { %v1153_v7 = vsel %vm802_vm2, %v2270_v6, 0.0 }
 0x5df   : > { %1154 = vadd.xlane.f32.xlu0 %v1153_v7 }
 0x5f5   : > { %1270 = vrot.lane.b32.xlu0 %v2470_v33, %s2296_s24 }
 0x5f9   : > { %1268 = vrot.lane.b32.xlu0 %v2476_v35, %s2296_s24  ;;  %v2218_v35 = vld [vmem:[%s2760_s3 + $0x28] sm:$0xff]  }
 0x5fa   : > { %2142 = vmatpush3.bf16.msra.mxu0 %v2218_v35  ;;  %v2244_v35 = vld [vmem:[%s2764_s7 + $0x74] ss:$8 sps:$4 sm:$0xff]  }
 0x5fb   : > { %2153 = vmatprep.subr.bf16.mxu0 %v2292_v19 }
 0x66c   : > { %v1155_v10 = vpop.xlane.xlu0 %1154 }
 0x66d   : > { %2271 = vrcp.f32 %v1155_v10  ;;  %v2230_v10 = vld [vmem:[%s2764_s7 + $0x30] ss:$8 sps:$4 sm:$0xff]  }
 0x670   : > { %v1271_v13 = vpop.permute.xlu0 %1270 }
 0x671   : > { %v1276_v15 = vsel %vm754_vm1, %v1271_v13, 0  ;;  %v2238_v13 = vld [vmem:[%s2764_s7 + $0x54] ss:$8 sps:$4 sm:$0xff]  }
 0x674   : > { %v1269_v33 = vpop.permute.xlu0 %1268 }
 0x677   : > { %v2272_v11 = vpop.eup %2271 }
 0x678   : > { %v1157_v12 = vmul.f32 %v2272_v11, %v2270_v6  ;;  %v2235_v11 = vld [vmem:[%s2764_s7 + $0x44] ss:$8 sps:$4 sm:$0xff]  }
 0x67a   : > { %v1158_v14 = vpack.c.bf16 %v1157_v12, %v1157_v12  ;;  %v2233_v12 = vld [vmem:[%s2764_s7 + $0x40] ss:$8 sps:$4 sm:$0xff]  }
 0x67c   : > { %2136 = vmatmul.mubr.msk.bf16.vlgmr.msra.gmra.mrb[16].mxu1 %vm802_vm2, %v1158_v14  ;;  %v2236_v14 = vld [vmem:[%s2764_s7 + $0x50] ss:$8 sps:$4 sm:$0xff]  }
 0x67d   : > { %2148 = vmatpush3.bf16.xpose.msra.mxu1 %v1276_v15  ;;  %2149 = vmatprep.mubr.msk.bf16.mxu1 %vm2293_vm0, %v2292_v19  ;;  %v2241_v15 = vld [vmem:[%s2764_s7 + $0x64] ss:$8 sps:$4 sm:$0xff]  }
 0x67e   : > { %2159 = vmatprep.subr.bf16.mxu1 %v2292_v19 }
 0x684   : > { %2150 = vmatmul.mubr.msk.bf16.vlgmr.msra.gmra.mrb[20].mxu1 %vm754_vm1, %v1269_v33  ;;  %v2239_v33 = vld [vmem:[%s2764_s7 + $0x60] ss:$8 sps:$4 sm:$0xff]  }
 0x685   : > { %2163 = vmatprep.mubr.msk.bf16.mxu1 %vm2293_vm0, %v2292_v19  ;;  %2160 = vmatpush3.bf16.msra.mxu1 %v2219_v39 }
 0x686   : > { %2161 = vmatprep.subr.bf16.mxu1 %v2292_v19 }
 0x74f   : > { %v1201_v16 = vpop.f32.mrb[16].mxu1 }
 0x750   : > { %v1207_v18 = vpack.c.bf16 %v1201_v16, %v1201_v16  ;;  %v2137_v20 = vpop.f32.mrb[17].mxu1  ;;  %v2242_v16 = vld [vmem:[%s2764_s7 + $0x70] ss:$8 sps:$4 sm:$0xff]  }
 0x751   : > { %v1204_v23 = vpop.f32.mrb[18].mxu1  ;;  %v2246_v20 = vld [vmem:[%s2766_s9] sm:$0xff]  }
 0x752   : > { %v2138_v25 = vpop.f32.mrb[19].mxu1  ;;  %2144 = vmatmul.mubr.msk.bf16.vlgmr.msra.gmra.mrb[20].mxu0 %vm754_vm1, %v1207_v18  ;;  %v2245_v18 = vld [vmem:[%s2766_s9 + $0x40] sm:$0xff]   ;;  %v2247_v23 = vld [vmem:[%s2766_s9 + $0x48] sm:$0xff]  }
 0x753   : > { %2155 = vmatprep.mubr.msk.bf16.mxu0 %vm2293_vm0, %v2292_v19  ;;  %v2220_v19 = vld [vmem:[%s2760_s3 + $0x38] sm:$0xff]   ;;  %v2248_v25 = vld [vmem:[%s2766_s9 + $0x8] sm:$0xff]  }
 0x754   : > { %2162 = vmatpush3.bf16.msra.mxu1 %v2220_v19 }
 0x755   : > { %2045 = vmatprep.subr.bf16.mxu1 %v2245_v18 }
 0x757   : > { %v1312_v26 = vpop.f32.mrb[20].mxu1 }
 0x758   : > { %v1318_v27 = vmul.f32 0.17677669, %v1312_v26  ;;  %v2151_v28 = vpop.f32.mrb[21].mxu1  ;;  %v2249_v26 = vld [vmem:[%s2766_s9 + $0x50] sm:$0xff]  }
 0x759   : > { %v1315_v29 = vpop.f32.mrb[22].mxu1  ;;  %v2251_v28 = vld [vmem:[%s2766_s9 + $0x58] sm:$0xff]  }
 0x75a   : > { %v2152_v30 = vpop.f32.mrb[23].mxu1  ;;  %v1319_v31 = vsel %vm802_vm2, %v1318_v27, -inf  ;;  %v2252_v29 = vld [vmem:[%s2766_s9 + $0x18] sm:$0xff]  }
 0x75b   : > { %1320 = vmax.xlane.f32.xlu0 %v1319_v31  ;;  %v2253_v30 = vld [vmem:[%s2766_s9 + $0x60] sm:$0xff]  }
 0x75c   : > { %v2254_v31 = vld [vmem:[%s2766_s9 + $0x20] sm:$0xff]  }
 0x7e8   : > { %v1321_v32 = vpop.xlane.xlu0 %1320 }
 0x7e9   : > { %v1322_v34 = vsub.f32 %v1318_v27, %v1321_v32  ;;  %v2250_v27 = vld [vmem:[%s2766_s9 + $0x10] sm:$0xff]   ;;  %v2255_v32 = vld [vmem:[%s2766_s9 + $0x68] sm:$0xff]  }
 0x7eb   : > { %v1323_v36 = vmul.f32 1.442695, %v1322_v34  ;;  %v2256_v34 = vld [vmem:[%s2766_s9 + $0x28] sm:$0xff]  }
 0x7ed   : > { %2273 = vpow2.f32 %v1323_v36 }
 0x7f7   : > { %v2274_v37 = vpop.eup %2273 }
 0x7f8   : > { %v1325_v38 = vsel %vm802_vm2, %v2274_v37, 0.0 }
 0x7f9   : > { %1326 = vadd.xlane.f32.xlu1 %v1325_v38 }
 0x80a   : > { %1331 = vrot.lane.b32.xlu1 %v2530_v8, %s2296_s24 }
 0x825   : > { %v1261_v40 = vpop.f32.mrb[20].mxu0 }
 0x826   : > { %v1267_v41 = vadd.f32 %v1261_v40, %v2578_v56  ;;  %v2145_v42 = vpop.f32.mrb[21].mxu0  ;;  %v1966_v56 = vld [vmem:[%s2761_s4] ss:$0 sm:$0xff] }
 0x827   : > { %v1264_v43 = vpop.f32.mrb[22].mxu0  ;;  %v1967_v40 = vld [vmem:[%s2762_s5] ss:$0 sm:$0xff] }
 0x828   : > { %v2146_v44 = vpop.f32.mrb[23].mxu0  ;;  %v1968_v42 = vld [vmem:[%s2763_s6] ss:$0 sm:$0xff] }
 0x886   : > { %v1327_v45 = vpop.xlane.xlu1 %1326 }
 0x887   : > { %2275 = vrcp.f32 %v1327_v45 }
 0x88a   : > { %v1332_v46 = vpop.permute.xlu1 %1331 }
 0x88b   : > { %v1337_v47 = vsel %vm818_vm3, %v1332_v46, 0  ;;  %v2257_v46 = vld [vmem:[%s2766_s9 + $0x70] sm:$0xff]  }
 0x88c   : > { %2154 = vmatpush3.bf16.msra.mxu0 %v1337_v47  ;;  %v2258_v47 = vld [vmem:[%s2766_s9 + $0x30] sm:$0xff]  }
 0x88d   : > { %1586 = vmatprep.subr.bf16.mxu0 %v2223_v63 }
 0x891   : > { %v2276_v8 = vpop.eup %2275 }
 0x892   : > { %v1329_v48 = vmul.f32 %v2276_v8, %v2274_v37  ;;  %v2259_v8 = vld [vmem:[%s2766_s9 + $0x78] sm:$0xff]  }
 0x894   : > { %v1330_v49 = vpack.c.bf16 %v1329_v48, %v1329_v48  ;;  %v2260_v48 = vld [vmem:[%s2766_s9 + $0x38] sm:$0xff]  }
 0x896   : > { %2156 = vmatmul.mubr.msk.bf16.vlgmr.msra.gmra.mrb[24].mxu0 %vm802_vm2, %v1330_v49  ;;  %v1494_v49 = vld [vmem:[%s2765_s8] sm:$0x3] }
 0x897   : > { %1618 = vmatprep.mubr.bf16.mxu0 %v2291_v2  ;;  %1587 = vmatpush1.bf16.msra.mxu0 %v2221_v62  ;;  %v1499_v19 = vrot.slane %v1494_v49, %v529_v24  ;;  %v1985_v24 = vld [vmem:[%s2767_s10] ss:$0 sm:$0xff] }
 0x898   : > { %1588 = vmatprep.subr.bf16.mxu0 %v2226_v0 }
 0x89b   : > { %1589 = vmatpush1.bf16.msra.mxu0 %v2224_v1 }
 0x969   : > { %v1373_v50 = vpop.f32.mrb[24].mxu0 }
 0x96a   : > { %v1379_v51 = vpack.c.bf16 %v1373_v50, %v1373_v50  ;;  %v2157_v52 = vpop.f32.mrb[25].mxu0  ;;  %v1503_v50 = vrot.slane %v1494_v49, %v533_v22 }
 0x96b   : > { %v1376_v53 = vpop.f32.mrb[26].mxu0 }
 0x96c   : > { %v2158_v54 = vpop.f32.mrb[27].mxu0  ;;  %2164 = vmatmul.mubr.msk.bf16.vlgmr.msra.gmra.mrb[24].mxu1 %vm754_vm1, %v1379_v51 }
 0x96d   : > { %2046 = vmatpush3.bf16.msra.mxu1 %v2246_v20 }
 0x96e   : > { %2047 = vmatprep.subr.bf16.mxu1 %v2247_v23 }
 0x971   : > { %2048 = vmatpush3.bf16.msra.mxu1 %v2248_v25 }
 0x972   : > { %2049 = vmatprep.subr.bf16.mxu1 %v2249_v26  ;;  %v2004_v26 = vld [vmem:[%s2770_s13] ss:$0 sm:$0xff] }
 0x975   : > { %2050 = vmatpush3.bf16.msra.mxu1 %v2250_v27 }
 0x976   : > { %2051 = vmatprep.subr.bf16.mxu1 %v2251_v28  ;;  %v2005_v28 = vld [vmem:[%s2771_s14] ss:$0 sm:$0xff] }
 0x979   : > { %2052 = vmatpush3.bf16.msra.mxu1 %v2252_v29 }
 0x97a   : > { %2053 = vmatprep.subr.bf16.mxu1 %v2253_v30 }
 0x97d   : > { %2054 = vmatpush3.bf16.msra.mxu1 %v2254_v31 }
 0x97e   : > { %2055 = vmatprep.subr.bf16.mxu1 %v2255_v32 }
 0x981   : > { %2056 = vmatpush3.bf16.msra.mxu1 %v2256_v34 }
 0x982   : > { %2057 = vmatprep.subr.bf16.mxu1 %v2257_v46 }
 0x985   : > { %2058 = vmatpush3.bf16.msra.mxu1 %v2258_v47 }
 0x986   : > { %2059 = vmatprep.subr.bf16.mxu1 %v2259_v8 }
 0x989   : > { %2060 = vmatpush3.bf16.msra.mxu1 %v2260_v48 }
 0xa3f   : > { %v1433_v55 = vpop.f32.mrb[24].mxu1 }
 0xa40   : > { %v1439_v57 = vadd.f32 %v1433_v55, %v1267_v41  ;;  %v2165_v58 = vpop.f32.mrb[25].mxu1 }
 0xa41   : > { %v1436_v2 = vpop.f32.mrb[26].mxu1 }
 0xa42   : > { %v1447_v59 = vadd.f32 %v1966_v56, %v1439_v57  ;;  %v2166_v60 = vpop.f32.mrb[27].mxu1 }
 0xa44   : > { %v1448_v61 = vadd.f32 %v1447_v59, %v2442_v17  ;;  %v2229_v17 = vld [vmem:[%s2764_s7 + $0x24] ss:$8 sps:$4 sm:$0xff]  }
 0xa45   : > { %1590 = vmatprep.subr.bf16.mxu0 %v2229_v17 }
 0xa46   : > { %1451 = vadd.xlane.f32.xlu1 %v1448_v61  ;;  %1591 = vmatpush1.bf16.msra.mxu0 %v2227_v3 }
 0xa47   : > { %1592 = vmatprep.subr.bf16.mxu0 %v2232_v9 }
 0xa4a   : > { %1593 = vmatpush1.bf16.msra.mxu0 %v2230_v10  ;;  %v2002_v10 = vld [vmem:[%s2768_s11] ss:$0 sm:$0xff] }
 0xa4b   : > { %1594 = vmatprep.subr.bf16.mxu0 %v2235_v11 }
 0xa4e   : > { %1595 = vmatpush1.bf16.msra.mxu0 %v2233_v12  ;;  %v2003_v12 = vld [vmem:[%s2769_s12] ss:$0 sm:$0xff] }
 0xa4f   : > { %1596 = vmatprep.subr.bf16.mxu0 %v2238_v13 }
 0xa52   : > { %1597 = vmatpush1.bf16.msra.mxu0 %v2236_v14 }
 0xa53   : > { %1598 = vmatprep.subr.bf16.mxu0 %v2241_v15 }
 0xa56   : > { %1599 = vmatpush1.bf16.msra.mxu0 %v2239_v33 }
 0xa57   : > { %1600 = vmatprep.subr.bf16.mxu0 %v2244_v35 }
 0xa5a   : > { %1601 = vmatpush1.bf16.msra.mxu0 %v2242_v16 }
 0xad3   : > { %v1452_v4 = vpop.xlane.xlu1 %1451 }
 0xad4   : > { %v1454_v5 = vmul.f32 0.0078125, %v1452_v4 }
 0xad6   : > { %v1455_v6 = vsub.f32 %v1448_v61, %v1454_v5 }
 0xad8   : > { %v1456_v7 = vmul.f32 %v1455_v6, %v1455_v6 }
 0xada   : > { %1457 = vadd.xlane.f32.xlu0 %v1456_v7 }
 0xb67   : > { %v1458_v36 = vpop.xlane.xlu0 %1457 }
 0xb68   : > { %v1459_v37 = vmul.f32 0.0078125, %v1458_v36 }
 0xb6a   : > { %v1460_v38 = vadd.f32 1e-05, %v1459_v37 }
 0xb6c   : > { %2277 = vrsqrt.f32 %v1460_v38 }
 0xb76   : > { %v2278_v39 = vpop.eup %2277 }
 0xb77   : > { %v1462_v41 = vmul.f32 %v2278_v39, %v1455_v6 }
 0xb79   : > { %v1469_v43 = vmul.f32 %v1967_v40, %v1462_v41 }
 0xb7b   : > { %v1476_v44 = vadd.f32 %v1968_v42, %v1469_v43 }
 0xb7d   : > { %v1477_v45 = vpack.c.bf16 %v1476_v44, %v1476_v44 }
 0xb7f   : > { %1619 = vmatmul.mubr.bf16.vlgmr.msra.gmra.mrb[28].mxu0 %v1477_v45 }
 0xc52   : > { %v1620_v51 = vpop.f32.mrb[28].mxu0 }
 0xc53   : > { %v1621_v52 = vadd.f32 %v1620_v51, %v1499_v19  ;;  %v1622_v53 = vpop.f32.mrb[29].mxu0 }
 0xc54   : > { %v1623_v54 = vadd.f32 %v1622_v53, %v1503_v50  ;;  %v1624_v55 = vpop.f32.mrb[30].mxu0 }
 0xc55   : > { %v1627_v56 = vmax.f32 %v1621_v52, 0.0  ;;  %v1625_v57 = vpop.f32.mrb[31].mxu0 }
 0xc56   : > { %v1628_v58 = vmax.f32 %v1623_v54, 0.0 }
 0xc57   : > { %v1629_v59 = vpack.c.bf16 %v1627_v56, %v1627_v56 }
 0xc58   : > { %v1630_v2 = vpack.c.bf16 %v1628_v58, %v1628_v58 }
 0xc5a   : > { %1798 = vmatprep.mubr.bf16.mxu1 %v1630_v2 }
 0xc5b   : > { %1799 = vmatmul.mubr.bf16.vlgmr.msra.gmra.mrb[28].mxu1 %v1629_v59 }
 0xd2e   : > { %v2061_v60 = vpop.f32.mrb[28].mxu1 }
 0xd2f   : > { %v2062_v61 = vpop.f32.mrb[29].mxu1 }
 0xd30   : > { %v2063_v21 = vadd.f32 %v2062_v61, %v2061_v60  ;;  %v2064_v22 = vpop.f32.mrb[30].mxu1 }
 0xd31   : > { %v2065_v62 = vpop.f32.mrb[31].mxu1 }
 0xd32   : > { %v1801_v63 = vadd.f32 %v2063_v21, %v1985_v24 }
 0xd34   : > { %v1806_v0 = vadd.f32 %v1801_v63, %v1476_v44 }
 0xd36   : > { %1809 = vadd.xlane.f32.xlu0 %v1806_v0 }
 0xdc3   : > { %v1810_v1 = vpop.xlane.xlu0 %1809 }
 0xdc4   : > { %v1811_v17 = vmul.f32 0.0078125, %v1810_v1 }
 0xdc6   : > { %v1812_v3 = vsub.f32 %v1806_v0, %v1811_v17 }
 0xdc8   : > { %v1813_v4 = vmul.f32 %v1812_v3, %v1812_v3 }
 0xdca   : > { %1814 = vadd.xlane.f32.xlu0 %v1813_v4 }
 0xe57   : > { %v1815_v5 = vpop.xlane.xlu0 %1814 }
 0xe58   : > { %v1816_v6 = vmul.f32 0.0078125, %v1815_v5 }
 0xe5a   : > { %v1817_v7 = vadd.f32 1e-05, %v1816_v6 }
 0xe5c   : > { %2279 = vrsqrt.f32 %v1817_v7 }
 0xe66   : > { %v2280_v9 = vpop.eup %2279 }
 0xe67   : > { %v1819_v11 = vmul.f32 %v2280_v9, %v1812_v3 }
 0xe69   : > { %v1826_v13 = vmul.f32 %v2002_v10, %v1819_v11 }
 0xe6b   : > { %v1833_v14 = vadd.f32 %v2003_v12, %v1826_v13 }
 0xe6d   : > { %1836 = vadd.xlane.f32.xlu0 %v1833_v14 }
 0xefa   : > { %v1837_v15 = vpop.xlane.xlu0 %1836 }
 0xefb   : > { %v1838_v33 = vmul.f32 0.0078125, %v1837_v15 }
 0xefd   : > { %v1839_v35 = vsub.f32 %v1833_v14, %v1838_v33 }
 0xeff   : > { %v1840_v16 = vmul.f32 %v1839_v35, %v1839_v35 }
 0xf01   : > { %1841 = vadd.xlane.f32.xlu0 %v1840_v16 }
 0xf8e   : > { %v1842_v18 = vpop.xlane.xlu0 %1841 }
 0xf8f   : > { %v1843_v20 = vmul.f32 0.0078125, %v1842_v18 }
 0xf91   : > { %v1844_v23 = vadd.f32 1e-05, %v1843_v20 }
 0xf93   : > { %2281 = vrsqrt.f32 %v1844_v23 }
 0xf9d   : > { %v2282_v25 = vpop.eup %2281 }
 0xf9e   : > { %v1846_v27 = vmul.f32 %v2282_v25, %v1839_v35 }
 0xfa0   : > { %v1853_v29 = vmul.f32 %v2004_v26, %v1846_v27 }
 0xfa2   : > { %v1860_v30 = vadd.f32 %v2005_v28, %v1853_v29 }
 0xfa4   : > { %1861 = vst [vmem:[%s489_s17] sm:$0xff] %v1860_v30 }
 0xfa5 PF: > { %s25_s18 = sadd.s32 1, %s2289_s18  }
 0xfa6   : > { %p22_p4 = scmp.ge.s32.totalorder %s25_s18, 4  }
 0xfa8   :  { %24 = sbr.rel (!%p22_p4) target bundleno = 1 (0x1), region = 110 }

</bundles_post_ra>
